<compile_context>
chip_gen: v7x
topology: tpu7x:2x2x1
jax: 0.10.0
libtpu: 0.0.40
codegen_flags: <defaults>
</compile_context>

<pallas_src>
import functools
import math

import numpy as np
import jax
import jax.numpy as jnp
from jax.experimental import pallas as pl
from jax.experimental.pallas import tpu as pltpu

# ----------------------------- configuration ------------------------------
IMG_SIZE = (128, 128)
NUM_CLASSES = 4
ANCHORS = [(4, 6), (8, 10), (12, 16), (20, 24), (28, 36), (40, 48),
           (56, 72), (80, 96), (112, 120)]
NUM_ANCHORS = len(ANCHORS)
BBOX_ATTRS = 5 + NUM_CLASSES
FEATURE_LENGTH = [IMG_SIZE[0] // 32, IMG_SIZE[0] // 16, IMG_SIZE[0] // 8]
IGNORE_THRESHOLD = 0.5

BS = 2
IN_H = IN_W = 16          # stride-8 level -> anchor_index [6, 7, 8]
N_TGT = 3                 # ground-truth boxes per image (fixed, synthetic)

LANES = 128


# ----------------- host-side target assignment (get_target) ----------------
def _bbox_iou_np(box1, box2):
    # x1y1x2y2=True branch of the reference bbox_iou (with the "+1" convention)
    b1_x1, b1_y1, b1_x2, b1_y2 = box1[:, 0], box1[:, 1], box1[:, 2], box1[:, 3]
    b2_x1, b2_y1, b2_x2, b2_y2 = box2[:, 0], box2[:, 1], box2[:, 2], box2[:, 3]
    ix1 = np.maximum(b1_x1, b2_x1)
    iy1 = np.maximum(b1_y1, b2_y1)
    ix2 = np.minimum(b1_x2, b2_x2)
    iy2 = np.minimum(b1_y2, b2_y2)
    inter = np.clip(ix2 - ix1 + 1, 0, None) * np.clip(iy2 - iy1 + 1, 0, None)
    a1 = (b1_x2 - b1_x1 + 1) * (b1_y2 - b1_y1 + 1)
    a2 = (b2_x2 - b2_x1 + 1) * (b2_y2 - b2_y1 + 1)
    return inter / (a1 + a2 - inter + 1e-16)


def get_target_np(targets, scaled_anchors, in_w, in_h):
    # TODO(synk): this per-GT argmax/scatter is a data-dependent Python loop in
    # the PyTorch reference as well; it is kept on host (numpy), not in Pallas.
    bs = targets.shape[0]
    level = FEATURE_LENGTH.index(in_w)
    anchor_index = [[0, 1, 2], [3, 4, 5], [6, 7, 8]][level]
    subtract_index = [0, 3, 6][level]
    na = NUM_ANCHORS // 3
    shape = (bs, na, in_h, in_w)
    mask = np.zeros(shape, np.float32)
    noobj = np.ones(shape, np.float32)
    tx = np.zeros(shape, np.float32)
    ty = np.zeros(shape, np.float32)
    tw = np.zeros(shape, np.float32)
    th = np.zeros(shape, np.float32)
    tcls = np.zeros(shape + (NUM_CLASSES,), np.float32)
    blsx = np.zeros(shape, np.float32)
    blsy = np.zeros(shape, np.float32)
    # NOTE: tconf is produced by the reference get_target but loss_conf uses
    # `mask` as its target; in this code path tconf == mask, so it is omitted.

    anchors_arr = np.array(scaled_anchors, np.float32)
    anchor_shapes = np.concatenate(
        [np.zeros((NUM_ANCHORS, 2), np.float32), anchors_arr], axis=1)

    for b in range(bs):
        for t in range(targets.shape[1]):
            gx = float(targets[b, t, 0]) * in_w
            gy = float(targets[b, t, 1]) * in_h
            gw = float(targets[b, t, 2]) * in_w
            gh = float(targets[b, t, 3]) * in_h
            gi = int(gx)
            gj = int(gy)
            gt_box = np.array([[0.0, 0.0, gw, gh]], np.float32)
            anch_ious = _bbox_iou_np(gt_box, anchor_shapes)
            best_n = int(np.argmax(anch_ious))
            if best_n not in anchor_index:
                continue
            if gj < in_h and gi < in_w:
                bn = best_n - subtract_index
                noobj[b, bn, gj, gi] = 0
                mask[b, bn, gj, gi] = 1
                tx[b, bn, gj, gi] = gx - gi
                ty[b, bn, gj, gi] = gy - gj
                tw[b, bn, gj, gi] = math.log(gw / anchors_arr[best_n, 0])
                th[b, bn, gj, gi] = math.log(gh / anchors_arr[best_n, 1])
                blsx[b, bn, gj, gi] = targets[b, t, 2]
                blsy[b, bn, gj, gi] = targets[b, t, 3]
                tcls[b, bn, gj, gi, int(targets[b, t, 4])] = 1
    return mask, noobj, tx, ty, tw, th, tcls, blsx, blsy


# ------------------------------ Pallas kernel ------------------------------
def yolo_loss_kernel(gt_ref, pred_ref, tgt_ref, const_ref, out_ref, *,
                     bs, rows_per_batch, num_classes, n_tgt, ignore_threshold):
    R = rows_per_batch
    bs_f = float(bs)

    def bce_logits(z, t):
        # BCE-with-logits: max(z,0) - z*t + log(1 + exp(-|z|)).
        # Matches the reference sigmoid -> clip(1e-7) -> BCE except for
        # |z| > ~16 where the reference saturates at -log(1e-7); numerically
        # stable and one fewer transcendental per element.
        return jnp.maximum(z, 0.0) - z * t + jnp.log(1.0 + jnp.exp(-jnp.abs(z)))

    # ---------------- load prediction / target slabs ----------------
    z_x = pred_ref[0]        # (rows, 128) raw logits
    z_y = pred_ref[1]
    w = pred_ref[2]
    h = pred_ref[3]
    z_conf = pred_ref[4]

    mask = tgt_ref[0]
    noobj = tgt_ref[1]
    tx = tgt_ref[2]
    ty = tgt_ref[3]
    tw = tgt_ref[4]
    th = tgt_ref[5]
    blsx = tgt_ref[6]
    blsy = tgt_ref[7]

    # ---------------------------- box losses ----------------------------
    wm = (2.0 - blsx * blsy) * mask   # box_loss_scale * mask, hoisted once

    loss_x = jnp.sum(bce_logits(z_x, tx) * wm) / bs_f
    loss_y = jnp.sum(bce_logits(z_y, ty) * wm) / bs_f
    loss_w = jnp.sum((w - tw) ** 2 * wm) * (0.5 / bs_f)
    loss_h = jnp.sum((h - th) ** 2 * wm) * (0.5 / bs_f)

    # -------------------------- confidence loss --------------------------
    bce_conf = bce_logits(z_conf, mask)
    conf_obj = jnp.sum(bce_conf * mask)

    # ---------------------------- class loss -----------------------------
    z_cls = pred_ref[pl.ds(5, num_classes), :, :]     # (C, rows, 128)
    t_cls = tgt_ref[pl.ds(8, num_classes), :, :]
    cls_bce_sum = jnp.sum(bce_logits(z_cls, t_cls), axis=0)   # (rows, 128)
    loss_cls = jnp.sum(cls_bce_sum * mask) / bs_f

    # ------------- get_ignore: per-batch max-IoU suppression -------------
    grid_x_c = const_ref[0]   # (R, 128) precomputed on host
    grid_y_c = const_ref[1]
    aw_c = const_ref[2]
    ah_c = const_ref[3]

    conf_noobj = jnp.float32(0.0)
    for b in range(bs):
        lo = b * R
        hi = lo + R
        xb = 1.0 / (1.0 + jnp.exp(-z_x[lo:hi]))
        yb = 1.0 / (1.0 + jnp.exp(-z_y[lo:hi]))
        px = xb + grid_x_c
        py = yb + grid_y_c
        pw = jnp.exp(w[lo:hi]) * aw_c
        ph = jnp.exp(h[lo:hi]) * ah_c
        p_x1 = px - pw * 0.5
        p_x2 = px + pw * 0.5
        p_y1 = py - ph * 0.5
        p_y2 = py + ph * 0.5
        p_area = pw * ph

        iou_max = jnp.zeros((R, LANES), jnp.float32)
        for t in range(n_tgt):
            base = (b * n_tgt + t) * 4
            gxs = gt_ref[base + 0]
            gys = gt_ref[base + 1]
            gws = gt_ref[base + 2]
            ghs = gt_ref[base + 3]
            g_x1 = gxs - gws * 0.5
            g_x2 = gxs + gws * 0.5
            g_y1 = gys - ghs * 0.5
            g_y2 = gys + ghs * 0.5
            g_area = gws * ghs
            iw = jnp.maximum(jnp.minimum(g_x2, p_x2) - jnp.maximum(g_x1, p_x1), 0.0)
            ihh = jnp.maximum(jnp.minimum(g_y2, p_y2) - jnp.maximum(g_y1, p_y1), 0.0)
            inter = iw * ihh
            iou = inter / (g_area + p_area - inter)   # reference jaccard (no +1/eps)
            iou_max = jnp.maximum(iou_max, iou)

        keep = (iou_max <= ignore_threshold).astype(jnp.float32)
        conf_noobj = conf_noobj + jnp.sum(bce_conf[lo:hi] * noobj[lo:hi] * keep)

    loss_conf = (conf_obj + conf_noobj) / bs_f
    loss = loss_x + loss_y + loss_w + loss_h + loss_conf + loss_cls

    out_ref[0] = loss
    out_ref[1] = loss_x
    out_ref[2] = loss_y
    out_ref[3] = loss_w
    out_ref[4] = loss_h
    out_ref[5] = loss_conf
    out_ref[6] = loss_cls


# ----------------------------- device wrapper -------------------------------
@functools.partial(jax.jit, static_argnames=("bs", "in_h", "in_w", "n_tgt"))
def _yolo_loss_device(x_nchw, packed_tgt, gt, const, *, bs, in_h, in_w, n_tgt):
    n_per_batch = 3 * in_h * in_w
    R = n_per_batch // LANES
    rows = bs * R

    # (bs, 3*(5+C), H, W) -> (attr, bs*3*H*W/128, 128), fused on device by jit.
    pred = jnp.transpose(
        x_nchw.reshape(bs, 3, BBOX_ATTRS, in_h, in_w),
        (2, 0, 1, 3, 4)).reshape(BBOX_ATTRS, rows, LANES).astype(jnp.float32)

    kernel = functools.partial(
        yolo_loss_kernel, bs=bs, rows_per_batch=R, num_classes=NUM_CLASSES,
        n_tgt=n_tgt, ignore_threshold=IGNORE_THRESHOLD)

    vmem = pl.BlockSpec(memory_space=pltpu.MemorySpace.VMEM)
    smem = pl.BlockSpec(memory_space=pltpu.MemorySpace.SMEM)

    return pl.pallas_call(
        kernel,
        out_shape=jax.ShapeDtypeStruct((7,), jnp.float32),
        in_specs=[smem, vmem, vmem, vmem],
        out_specs=smem,
    )(gt, pred, packed_tgt, const)


def yolo_loss_forward(x_nchw, targets):
    """Returns [loss, loss_x, loss_y, loss_w, loss_h, loss_conf, loss_cls]."""
    bs, _, in_h, in_w = x_nchw.shape
    n_per_batch = 3 * in_h * in_w
    assert n_per_batch % LANES == 0, "3*H*W must be a multiple of 128"
    R = n_per_batch // LANES
    rows = bs * R

    stride_h = IMG_SIZE[1] / in_h
    stride_w = IMG_SIZE[0] / in_w
    scaled_anchors = [(aw / stride_w, ah / stride_h) for aw, ah in ANCHORS]
    level = FEATURE_LENGTH.index(in_w)
    anchor_index = [[0, 1, 2], [3, 4, 5], [6, 7, 8]][level]
    level_anchors = np.array(
        [scaled_anchors[k] for k in anchor_index], np.float32)   # (3, 2)

    # host-side get_target (data-dependent scatter, same as reference)
    tgt_np = np.asarray(targets, np.float32)
    n_tgt = tgt_np.shape[1]
    (mask, noobj, tx, ty, tw, th, tcls, blsx, blsy) = get_target_np(
        tgt_np, scaled_anchors, in_w, in_h)

    # One packed (8 + C, rows, 128) target slab -> a single H2D transfer.
    base8 = np.stack([mask, noobj, tx, ty, tw, th, blsx, blsy], 0).reshape(
        8, rows, LANES)
    tcls_k = np.transpose(tcls, (4, 0, 1, 2, 3)).reshape(
        NUM_CLASSES, rows, LANES)
    packed_tgt = np.concatenate([base8, tcls_k], 0).astype(np.float32)

    # Precomputed decode constants (grid_x, grid_y, anchor_w, anchor_h) for one
    # batch worth of cells: (4, R, 128).
    n = np.arange(n_per_batch)
    gi = (n % in_w).astype(np.float32)
    gj = ((n // in_w) % in_h).astype(np.float32)
    a = n // (in_h * in_w)
    const = np.stack(
        [gi, gj, level_anchors[a, 0], level_anchors[a, 1]], 0
    ).reshape(4, R, LANES).astype(np.float32)

    # Ground-truth boxes in grid units, flattened 1-D for SMEM (avoid 2-D pad).
    gt = (tgt_np[:, :, :4] *
          np.array([in_w, in_h, in_w, in_h], np.float32)).reshape(
              bs * n_tgt * 4).astype(np.float32)

    return _yolo_loss_device(
        x_nchw, jnp.asarray(packed_tgt), jnp.asarray(gt), jnp.asarray(const),
        bs=bs, in_h=in_h, in_w=in_w, n_tgt=n_tgt)


# ----------------------------------- main -----------------------------------
if __name__ == "__main__":
    key = jax.random.PRNGKey(0)
    k1, k2, k3, k4 = jax.random.split(key, 4)

    # raw network output: (bs, 3*(5+num_classes), H, W)
    x = jax.random.normal(k1, (BS, 3 * BBOX_ATTRS, IN_H, IN_W), jnp.float32)

    # targets: (bs, n_tgt, 5) = normalized (x, y, w, h, class)
    xy = jax.random.uniform(k2, (BS, N_TGT, 2), minval=0.05, maxval=0.95)
    wh = jax.random.uniform(k3, (BS, N_TGT, 2), minval=0.10, maxval=0.90)
    cls = jax.random.randint(k4, (BS, N_TGT, 1), 0, NUM_CLASSES).astype(jnp.float32)
    targets = jnp.concatenate([xy, wh, cls], axis=-1)

    out = yolo_loss_forward(x, targets)
    out = jax.block_until_ready(out)
    out_np = np.asarray(out)
    assert out_np.shape == (7,)
    assert np.all(np.isfinite(out_np)), out_np
    print("KERNEL_OK")
</pallas_src>

<mosaic_0001>
module attributes {stable_mosaic.version = 11 : i64} {
  func.func @yolo_loss_kernel(%arg0: memref<24xf32, #tpu.memory_space<smem>>, %arg1: memref<9x12x128xf32, #tpu.memory_space<vmem>>, %arg2: memref<12x12x128xf32, #tpu.memory_space<vmem>>, %arg3: memref<4x6x128xf32, #tpu.memory_space<vmem>>, %arg4: memref<7xf32, #tpu.memory_space<smem>>) attributes {dimension_semantics = [], scalar_prefetch = 0 : i64, scratch_operands = 0 : i64, tpu.core_type = #tpu.core_type<tc>} {
    %c0 = arith.constant 0 : index
    %c0_0 = arith.constant 0 : index
    %c0_1 = arith.constant 0 : index
    %0 = vector.load %arg1[%c0, %c0_0, %c0_1] : memref<9x12x128xf32, #tpu.memory_space<vmem>>, vector<1x12x128xf32>
    %1 = vector.shape_cast %0 : vector<1x12x128xf32> to vector<12x128xf32>
    %c1 = arith.constant 1 : index
    %c0_2 = arith.constant 0 : index
    %c0_3 = arith.constant 0 : index
    %2 = vector.load %arg1[%c1, %c0_2, %c0_3] : memref<9x12x128xf32, #tpu.memory_space<vmem>>, vector<1x12x128xf32>
    %3 = vector.shape_cast %2 : vector<1x12x128xf32> to vector<12x128xf32>
    %c2 = arith.constant 2 : index
    %c0_4 = arith.constant 0 : index
    %c0_5 = arith.constant 0 : index
    %4 = vector.load %arg1[%c2, %c0_4, %c0_5] : memref<9x12x128xf32, #tpu.memory_space<vmem>>, vector<1x12x128xf32>
    %5 = vector.shape_cast %4 : vector<1x12x128xf32> to vector<12x128xf32>
    %c3 = arith.constant 3 : index
    %c0_6 = arith.constant 0 : index
    %c0_7 = arith.constant 0 : index
    %6 = vector.load %arg1[%c3, %c0_6, %c0_7] : memref<9x12x128xf32, #tpu.memory_space<vmem>>, vector<1x12x128xf32>
    %7 = vector.shape_cast %6 : vector<1x12x128xf32> to vector<12x128xf32>
    %c4 = arith.constant 4 : index
    %c0_8 = arith.constant 0 : index
    %c0_9 = arith.constant 0 : index
    %8 = vector.load %arg1[%c4, %c0_8, %c0_9] : memref<9x12x128xf32, #tpu.memory_space<vmem>>, vector<1x12x128xf32>
    %9 = vector.shape_cast %8 : vector<1x12x128xf32> to vector<12x128xf32>
    %c0_10 = arith.constant 0 : index
    %c0_11 = arith.constant 0 : index
    %c0_12 = arith.constant 0 : index
    %10 = vector.load %arg2[%c0_10, %c0_11, %c0_12] : memref<12x12x128xf32, #tpu.memory_space<vmem>>, vector<1x12x128xf32>
    %11 = vector.shape_cast %10 : vector<1x12x128xf32> to vector<12x128xf32>
    %c1_13 = arith.constant 1 : index
    %c0_14 = arith.constant 0 : index
    %c0_15 = arith.constant 0 : index
    %12 = vector.load %arg2[%c1_13, %c0_14, %c0_15] : memref<12x12x128xf32, #tpu.memory_space<vmem>>, vector<1x12x128xf32>
    %13 = vector.shape_cast %12 : vector<1x12x128xf32> to vector<12x128xf32>
    %c2_16 = arith.constant 2 : index
    %c0_17 = arith.constant 0 : index
    %c0_18 = arith.constant 0 : index
    %14 = vector.load %arg2[%c2_16, %c0_17, %c0_18] : memref<12x12x128xf32, #tpu.memory_space<vmem>>, vector<1x12x128xf32>
    %15 = vector.shape_cast %14 : vector<1x12x128xf32> to vector<12x128xf32>
    %c3_19 = arith.constant 3 : index
    %c0_20 = arith.constant 0 : index
    %c0_21 = arith.constant 0 : index
    %16 = vector.load %arg2[%c3_19, %c0_20, %c0_21] : memref<12x12x128xf32, #tpu.memory_space<vmem>>, vector<1x12x128xf32>
    %17 = vector.shape_cast %16 : vector<1x12x128xf32> to vector<12x128xf32>
    %c4_22 = arith.constant 4 : index
    %c0_23 = arith.constant 0 : index
    %c0_24 = arith.constant 0 : index
    %18 = vector.load %arg2[%c4_22, %c0_23, %c0_24] : memref<12x12x128xf32, #tpu.memory_space<vmem>>, vector<1x12x128xf32>
    %19 = vector.shape_cast %18 : vector<1x12x128xf32> to vector<12x128xf32>
    %c5 = arith.constant 5 : index
    %c0_25 = arith.constant 0 : index
    %c0_26 = arith.constant 0 : index
    %20 = vector.load %arg2[%c5, %c0_25, %c0_26] : memref<12x12x128xf32, #tpu.memory_space<vmem>>, vector<1x12x128xf32>
    %21 = vector.shape_cast %20 : vector<1x12x128xf32> to vector<12x128xf32>
    %c6 = arith.constant 6 : index
    %c0_27 = arith.constant 0 : index
    %c0_28 = arith.constant 0 : index
    %22 = vector.load %arg2[%c6, %c0_27, %c0_28] : memref<12x12x128xf32, #tpu.memory_space<vmem>>, vector<1x12x128xf32>
    %23 = vector.shape_cast %22 : vector<1x12x128xf32> to vector<12x128xf32>
    %c7 = arith.constant 7 : index
    %c0_29 = arith.constant 0 : index
    %c0_30 = arith.constant 0 : index
    %24 = vector.load %arg2[%c7, %c0_29, %c0_30] : memref<12x12x128xf32, #tpu.memory_space<vmem>>, vector<1x12x128xf32>
    %25 = vector.shape_cast %24 : vector<1x12x128xf32> to vector<12x128xf32>
    %26 = arith.mulf %23, %25 : vector<12x128xf32>
    %cst = arith.constant 2.000000e+00 : f32
    %27 = vector.broadcast %cst : f32 to vector<12x128xf32>
    %28 = arith.subf %27, %26 : vector<12x128xf32>
    %29 = arith.mulf %28, %11 : vector<12x128xf32>
    %cst_31 = arith.constant 0.000000e+00 : f32
    %30 = vector.broadcast %cst_31 : f32 to vector<12x128xf32>
    %31 = arith.maximumf %1, %30 : vector<12x128xf32>
    %32 = arith.mulf %1, %15 : vector<12x128xf32>
    %33 = arith.subf %31, %32 : vector<12x128xf32>
    %34 = math.absf %1 : vector<12x128xf32>
    %cst_32 = arith.constant 0.000000e+00 : f32
    %35 = vector.broadcast %cst_32 : f32 to vector<12x128xf32>
    %36 = arith.subf %35, %34 : vector<12x128xf32>
    %37 = math.exp %36 : vector<12x128xf32>
    %cst_33 = arith.constant 1.000000e+00 : f32
    %38 = vector.broadcast %cst_33 : f32 to vector<12x128xf32>
    %39 = arith.addf %38, %37 : vector<12x128xf32>
    %40 = math.log %39 : vector<12x128xf32>
    %41 = arith.addf %33, %40 : vector<12x128xf32>
    %42 = arith.mulf %41, %29 : vector<12x128xf32>
    %43 = vector.shape_cast %42 : vector<12x128xf32> to vector<1x12x128xf32>
    %cst_34 = arith.constant dense<0.000000e+00> : vector<1xf32>
    %44 = vector.multi_reduction <add>, %43, %cst_34 [1, 2] : vector<1x12x128xf32> to vector<1xf32>
    %45 = vector.shape_cast %44 : vector<1xf32> to vector<1x1x1xf32>
    %46 = vector.extract %45[0, 0, 0] : f32 from vector<1x1x1xf32>
    %cst_35 = arith.constant 2.000000e+00 : f32
    %47 = arith.divf %46, %cst_35 : f32
    %cst_36 = arith.constant 0.000000e+00 : f32
    %48 = vector.broadcast %cst_36 : f32 to vector<12x128xf32>
    %49 = arith.maximumf %3, %48 : vector<12x128xf32>
    %50 = arith.mulf %3, %17 : vector<12x128xf32>
    %51 = arith.subf %49, %50 : vector<12x128xf32>
    %52 = math.absf %3 : vector<12x128xf32>
    %cst_37 = arith.constant 0.000000e+00 : f32
    %53 = vector.broadcast %cst_37 : f32 to vector<12x128xf32>
    %54 = arith.subf %53, %52 : vector<12x128xf32>
    %55 = math.exp %54 : vector<12x128xf32>
    %cst_38 = arith.constant 1.000000e+00 : f32
    %56 = vector.broadcast %cst_38 : f32 to vector<12x128xf32>
    %57 = arith.addf %56, %55 : vector<12x128xf32>
    %58 = math.log %57 : vector<12x128xf32>
    %59 = arith.addf %51, %58 : vector<12x128xf32>
    %60 = arith.mulf %59, %29 : vector<12x128xf32>
    %61 = vector.shape_cast %60 : vector<12x128xf32> to vector<1x12x128xf32>
    %cst_39 = arith.constant dense<0.000000e+00> : vector<1xf32>
    %62 = vector.multi_reduction <add>, %61, %cst_39 [1, 2] : vector<1x12x128xf32> to vector<1xf32>
    %63 = vector.shape_cast %62 : vector<1xf32> to vector<1x1x1xf32>
    %64 = vector.extract %63[0, 0, 0] : f32 from vector<1x1x1xf32>
    %cst_40 = arith.constant 2.000000e+00 : f32
    %65 = arith.divf %64, %cst_40 : f32
    %66 = arith.subf %5, %19 : vector<12x128xf32>
    %67 = arith.mulf %66, %66 : vector<12x128xf32>
    %68 = arith.mulf %67, %29 : vector<12x128xf32>
    %69 = vector.shape_cast %68 : vector<12x128xf32> to vector<1x12x128xf32>
    %cst_41 = arith.constant dense<0.000000e+00> : vector<1xf32>
    %70 = vector.multi_reduction <add>, %69, %cst_41 [1, 2] : vector<1x12x128xf32> to vector<1xf32>
    %71 = vector.shape_cast %70 : vector<1xf32> to vector<1x1x1xf32>
    %72 = vector.extract %71[0, 0, 0] : f32 from vector<1x1x1xf32>
    %cst_42 = arith.constant 2.500000e-01 : f32
    %73 = arith.mulf %72, %cst_42 : f32
    %74 = arith.subf %7, %21 : vector<12x128xf32>
    %75 = arith.mulf %74, %74 : vector<12x128xf32>
    %76 = arith.mulf %75, %29 : vector<12x128xf32>
    %77 = vector.shape_cast %76 : vector<12x128xf32> to vector<1x12x128xf32>
    %cst_43 = arith.constant dense<0.000000e+00> : vector<1xf32>
    %78 = vector.multi_reduction <add>, %77, %cst_43 [1, 2] : vector<1x12x128xf32> to vector<1xf32>
    %79 = vector.shape_cast %78 : vector<1xf32> to vector<1x1x1xf32>
    %80 = vector.extract %79[0, 0, 0] : f32 from vector<1x1x1xf32>
    %cst_44 = arith.constant 2.500000e-01 : f32
    %81 = arith.mulf %80, %cst_44 : f32
    %cst_45 = arith.constant 0.000000e+00 : f32
    %82 = vector.broadcast %cst_45 : f32 to vector<12x128xf32>
    %83 = arith.maximumf %9, %82 : vector<12x128xf32>
    %84 = arith.mulf %9, %11 : vector<12x128xf32>
    %85 = arith.subf %83, %84 : vector<12x128xf32>
    %86 = math.absf %9 : vector<12x128xf32>
    %cst_46 = arith.constant 0.000000e+00 : f32
    %87 = vector.broadcast %cst_46 : f32 to vector<12x128xf32>
    %88 = arith.subf %87, %86 : vector<12x128xf32>
    %89 = math.exp %88 : vector<12x128xf32>
    %cst_47 = arith.constant 1.000000e+00 : f32
    %90 = vector.broadcast %cst_47 : f32 to vector<12x128xf32>
    %91 = arith.addf %90, %89 : vector<12x128xf32>
    %92 = math.log %91 : vector<12x128xf32>
    %93 = arith.addf %85, %92 : vector<12x128xf32>
    %94 = arith.mulf %93, %11 : vector<12x128xf32>
    %95 = vector.shape_cast %94 : vector<12x128xf32> to vector<1x12x128xf32>
    %cst_48 = arith.constant dense<0.000000e+00> : vector<1xf32>
    %96 = vector.multi_reduction <add>, %95, %cst_48 [1, 2] : vector<1x12x128xf32> to vector<1xf32>
    %97 = vector.shape_cast %96 : vector<1xf32> to vector<1x1x1xf32>
    %98 = vector.extract %97[0, 0, 0] : f32 from vector<1x1x1xf32>
    %c5_49 = arith.constant 5 : index
    %c0_50 = arith.constant 0 : index
    %c0_51 = arith.constant 0 : index
    %99 = vector.load %arg1[%c5_49, %c0_50, %c0_51] : memref<9x12x128xf32, #tpu.memory_space<vmem>>, vector<4x12x128xf32>
    %c8 = arith.constant 8 : index
    %c0_52 = arith.constant 0 : index
    %c0_53 = arith.constant 0 : index
    %100 = vector.load %arg2[%c8, %c0_52, %c0_53] : memref<12x12x128xf32, #tpu.memory_space<vmem>>, vector<4x12x128xf32>
    %cst_54 = arith.constant 0.000000e+00 : f32
    %101 = vector.broadcast %cst_54 : f32 to vector<4x12x128xf32>
    %102 = arith.maximumf %99, %101 : vector<4x12x128xf32>
    %103 = arith.mulf %99, %100 : vector<4x12x128xf32>
    %104 = arith.subf %102, %103 : vector<4x12x128xf32>
    %105 = math.absf %99 : vector<4x12x128xf32>
    %cst_55 = arith.constant 0.000000e+00 : f32
    %106 = vector.broadcast %cst_55 : f32 to vector<4x12x128xf32>
    %107 = arith.subf %106, %105 : vector<4x12x128xf32>
    %108 = math.exp %107 : vector<4x12x128xf32>
    %cst_56 = arith.constant 1.000000e+00 : f32
    %109 = vector.broadcast %cst_56 : f32 to vector<4x12x128xf32>
    %110 = arith.addf %109, %108 : vector<4x12x128xf32>
    %111 = math.log %110 : vector<4x12x128xf32>
    %112 = arith.addf %104, %111 : vector<4x12x128xf32>
    %cst_57 = arith.constant dense<0.000000e+00> : vector<12x128xf32>
    %113 = vector.multi_reduction <add>, %112, %cst_57 [0] : vector<4x12x128xf32> to vector<12x128xf32>
    %114 = arith.mulf %113, %11 : vector<12x128xf32>
    %115 = vector.shape_cast %114 : vector<12x128xf32> to vector<1x12x128xf32>
    %cst_58 = arith.constant dense<0.000000e+00> : vector<1xf32>
    %116 = vector.multi_reduction <add>, %115, %cst_58 [1, 2] : vector<1x12x128xf32> to vector<1xf32>
    %117 = vector.shape_cast %116 : vector<1xf32> to vector<1x1x1xf32>
    %118 = vector.extract %117[0, 0, 0] : f32 from vector<1x1x1xf32>
    %cst_59 = arith.constant 2.000000e+00 : f32
    %119 = arith.divf %118, %cst_59 : f32
    %c0_60 = arith.constant 0 : index
    %c0_61 = arith.constant 0 : index
    %c0_62 = arith.constant 0 : index
    %120 = vector.load %arg3[%c0_60, %c0_61, %c0_62] : memref<4x6x128xf32, #tpu.memory_space<vmem>>, vector<1x6x128xf32>
    %121 = vector.shape_cast %120 : vector<1x6x128xf32> to vector<6x128xf32>
    %c1_63 = arith.constant 1 : index
    %c0_64 = arith.constant 0 : index
    %c0_65 = arith.constant 0 : index
    %122 = vector.load %arg3[%c1_63, %c0_64, %c0_65] : memref<4x6x128xf32, #tpu.memory_space<vmem>>, vector<1x6x128xf32>
    %123 = vector.shape_cast %122 : vector<1x6x128xf32> to vector<6x128xf32>
    %c2_66 = arith.constant 2 : index
    %c0_67 = arith.constant 0 : index
    %c0_68 = arith.constant 0 : index
    %124 = vector.load %arg3[%c2_66, %c0_67, %c0_68] : memref<4x6x128xf32, #tpu.memory_space<vmem>>, vector<1x6x128xf32>
    %125 = vector.shape_cast %124 : vector<1x6x128xf32> to vector<6x128xf32>
    %c3_69 = arith.constant 3 : index
    %c0_70 = arith.constant 0 : index
    %c0_71 = arith.constant 0 : index
    %126 = vector.load %arg3[%c3_69, %c0_70, %c0_71] : memref<4x6x128xf32, #tpu.memory_space<vmem>>, vector<1x6x128xf32>
    %127 = vector.shape_cast %126 : vector<1x6x128xf32> to vector<6x128xf32>
    %128 = vector.extract_strided_slice %1 {offsets = [0, 0], sizes = [6, 128], strides = [1, 1]} : vector<12x128xf32> to vector<6x128xf32>
    %cst_72 = arith.constant 0.000000e+00 : f32
    %129 = vector.broadcast %cst_72 : f32 to vector<6x128xf32>
    %130 = arith.subf %129, %128 : vector<6x128xf32>
    %131 = math.exp %130 : vector<6x128xf32>
    %cst_73 = arith.constant 1.000000e+00 : f32
    %132 = vector.broadcast %cst_73 : f32 to vector<6x128xf32>
    %133 = arith.addf %132, %131 : vector<6x128xf32>
    %cst_74 = arith.constant 1.000000e+00 : f32
    %134 = vector.broadcast %cst_74 : f32 to vector<6x128xf32>
    %135 = arith.divf %134, %133 : vector<6x128xf32>
    %136 = vector.extract_strided_slice %3 {offsets = [0, 0], sizes = [6, 128], strides = [1, 1]} : vector<12x128xf32> to vector<6x128xf32>
    %cst_75 = arith.constant 0.000000e+00 : f32
    %137 = vector.broadcast %cst_75 : f32 to vector<6x128xf32>
    %138 = arith.subf %137, %136 : vector<6x128xf32>
    %139 = math.exp %138 : vector<6x128xf32>
    %cst_76 = arith.constant 1.000000e+00 : f32
    %140 = vector.broadcast %cst_76 : f32 to vector<6x128xf32>
    %141 = arith.addf %140, %139 : vector<6x128xf32>
    %cst_77 = arith.constant 1.000000e+00 : f32
    %142 = vector.broadcast %cst_77 : f32 to vector<6x128xf32>
    %143 = arith.divf %142, %141 : vector<6x128xf32>
    %144 = arith.addf %135, %121 : vector<6x128xf32>
    %145 = arith.addf %143, %123 : vector<6x128xf32>
    %146 = vector.extract_strided_slice %5 {offsets = [0, 0], sizes = [6, 128], strides = [1, 1]} : vector<12x128xf32> to vector<6x128xf32>
    %147 = math.exp %146 : vector<6x128xf32>
    %148 = arith.mulf %147, %125 : vector<6x128xf32>
    %149 = vector.extract_strided_slice %7 {offsets = [0, 0], sizes = [6, 128], strides = [1, 1]} : vector<12x128xf32> to vector<6x128xf32>
    %150 = math.exp %149 : vector<6x128xf32>
    %151 = arith.mulf %150, %127 : vector<6x128xf32>
    %cst_78 = arith.constant 5.000000e-01 : f32
    %152 = vector.broadcast %cst_78 : f32 to vector<6x128xf32>
    %153 = arith.mulf %148, %152 : vector<6x128xf32>
    %154 = arith.subf %144, %153 : vector<6x128xf32>
    %cst_79 = arith.constant 5.000000e-01 : f32
    %155 = vector.broadcast %cst_79 : f32 to vector<6x128xf32>
    %156 = arith.mulf %148, %155 : vector<6x128xf32>
    %157 = arith.addf %144, %156 : vector<6x128xf32>
    %cst_80 = arith.constant 5.000000e-01 : f32
    %158 = vector.broadcast %cst_80 : f32 to vector<6x128xf32>
    %159 = arith.mulf %151, %158 : vector<6x128xf32>
    %160 = arith.subf %145, %159 : vector<6x128xf32>
    %cst_81 = arith.constant 5.000000e-01 : f32
    %161 = vector.broadcast %cst_81 : f32 to vector<6x128xf32>
    %162 = arith.mulf %151, %161 : vector<6x128xf32>
    %163 = arith.addf %145, %162 : vector<6x128xf32>
    %164 = arith.mulf %148, %151 : vector<6x128xf32>
    %cst_82 = arith.constant 0.000000e+00 : f32
    %165 = vector.broadcast %cst_82 : f32 to vector<6x128xf32>
    %c0_83 = arith.constant 0 : index
    %166 = memref.load %arg0[%c0_83] : memref<24xf32, #tpu.memory_space<smem>>
    %c1_84 = arith.constant 1 : index
    %167 = memref.load %arg0[%c1_84] : memref<24xf32, #tpu.memory_space<smem>>
    %c2_85 = arith.constant 2 : index
    %168 = memref.load %arg0[%c2_85] : memref<24xf32, #tpu.memory_space<smem>>
    %c3_86 = arith.constant 3 : index
    %169 = memref.load %arg0[%c3_86] : memref<24xf32, #tpu.memory_space<smem>>
    %cst_87 = arith.constant 5.000000e-01 : f32
    %170 = arith.mulf %168, %cst_87 : f32
    %171 = arith.subf %166, %170 : f32
    %cst_88 = arith.constant 5.000000e-01 : f32
    %172 = arith.mulf %168, %cst_88 : f32
    %173 = arith.addf %166, %172 : f32
    %cst_89 = arith.constant 5.000000e-01 : f32
    %174 = arith.mulf %169, %cst_89 : f32
    %175 = arith.subf %167, %174 : f32
    %cst_90 = arith.constant 5.000000e-01 : f32
    %176 = arith.mulf %169, %cst_90 : f32
    %177 = arith.addf %167, %176 : f32
    %178 = arith.mulf %168, %169 : f32
    %179 = vector.broadcast %173 : f32 to vector<6x128xf32>
    %180 = arith.minimumf %179, %157 : vector<6x128xf32>
    %181 = vector.broadcast %171 : f32 to vector<6x128xf32>
    %182 = arith.maximumf %181, %154 : vector<6x128xf32>
    %183 = arith.subf %180, %182 : vector<6x128xf32>
    %cst_91 = arith.constant 0.000000e+00 : f32
    %184 = vector.broadcast %cst_91 : f32 to vector<6x128xf32>
    %185 = arith.maximumf %183, %184 : vector<6x128xf32>
    %186 = vector.broadcast %177 : f32 to vector<6x128xf32>
    %187 = arith.minimumf %186, %163 : vector<6x128xf32>
    %188 = vector.broadcast %175 : f32 to vector<6x128xf32>
    %189 = arith.maximumf %188, %160 : vector<6x128xf32>
    %190 = arith.subf %187, %189 : vector<6x128xf32>
    %cst_92 = arith.constant 0.000000e+00 : f32
    %191 = vector.broadcast %cst_92 : f32 to vector<6x128xf32>
    %192 = arith.maximumf %190, %191 : vector<6x128xf32>
    %193 = arith.mulf %185, %192 : vector<6x128xf32>
    %194 = vector.broadcast %178 : f32 to vector<6x128xf32>
    %195 = arith.addf %194, %164 : vector<6x128xf32>
    %196 = arith.subf %195, %193 : vector<6x128xf32>
    %197 = arith.divf %193, %196 : vector<6x128xf32>
    %198 = arith.maximumf %165, %197 : vector<6x128xf32>
    %c4_93 = arith.constant 4 : index
    %199 = memref.load %arg0[%c4_93] : memref<24xf32, #tpu.memory_space<smem>>
    %c5_94 = arith.constant 5 : index
    %200 = memref.load %arg0[%c5_94] : memref<24xf32, #tpu.memory_space<smem>>
    %c6_95 = arith.constant 6 : index
    %201 = memref.load %arg0[%c6_95] : memref<24xf32, #tpu.memory_space<smem>>
    %c7_96 = arith.constant 7 : index
    %202 = memref.load %arg0[%c7_96] : memref<24xf32, #tpu.memory_space<smem>>
    %cst_97 = arith.constant 5.000000e-01 : f32
    %203 = arith.mulf %201, %cst_97 : f32
    %204 = arith.subf %199, %203 : f32
    %cst_98 = arith.constant 5.000000e-01 : f32
    %205 = arith.mulf %201, %cst_98 : f32
    %206 = arith.addf %199, %205 : f32
    %cst_99 = arith.constant 5.000000e-01 : f32
    %207 = arith.mulf %202, %cst_99 : f32
    %208 = arith.subf %200, %207 : f32
    %cst_100 = arith.constant 5.000000e-01 : f32
    %209 = arith.mulf %202, %cst_100 : f32
    %210 = arith.addf %200, %209 : f32
    %211 = arith.mulf %201, %202 : f32
    %212 = vector.broadcast %206 : f32 to vector<6x128xf32>
    %213 = arith.minimumf %212, %157 : vector<6x128xf32>
    %214 = vector.broadcast %204 : f32 to vector<6x128xf32>
    %215 = arith.maximumf %214, %154 : vector<6x128xf32>
    %216 = arith.subf %213, %215 : vector<6x128xf32>
    %cst_101 = arith.constant 0.000000e+00 : f32
    %217 = vector.broadcast %cst_101 : f32 to vector<6x128xf32>
    %218 = arith.maximumf %216, %217 : vector<6x128xf32>
    %219 = vector.broadcast %210 : f32 to vector<6x128xf32>
    %220 = arith.minimumf %219, %163 : vector<6x128xf32>
    %221 = vector.broadcast %208 : f32 to vector<6x128xf32>
    %222 = arith.maximumf %221, %160 : vector<6x128xf32>
    %223 = arith.subf %220, %222 : vector<6x128xf32>
    %cst_102 = arith.constant 0.000000e+00 : f32
    %224 = vector.broadcast %cst_102 : f32 to vector<6x128xf32>
    %225 = arith.maximumf %223, %224 : vector<6x128xf32>
    %226 = arith.mulf %218, %225 : vector<6x128xf32>
    %227 = vector.broadcast %211 : f32 to vector<6x128xf32>
    %228 = arith.addf %227, %164 : vector<6x128xf32>
    %229 = arith.subf %228, %226 : vector<6x128xf32>
    %230 = arith.divf %226, %229 : vector<6x128xf32>
    %231 = arith.maximumf %198, %230 : vector<6x128xf32>
    %c8_103 = arith.constant 8 : index
    %232 = memref.load %arg0[%c8_103] : memref<24xf32, #tpu.memory_space<smem>>
    %c9 = arith.constant 9 : index
    %233 = memref.load %arg0[%c9] : memref<24xf32, #tpu.memory_space<smem>>
    %c10 = arith.constant 10 : index
    %234 = memref.load %arg0[%c10] : memref<24xf32, #tpu.memory_space<smem>>
    %c11 = arith.constant 11 : index
    %235 = memref.load %arg0[%c11] : memref<24xf32, #tpu.memory_space<smem>>
    %cst_104 = arith.constant 5.000000e-01 : f32
    %236 = arith.mulf %234, %cst_104 : f32
    %237 = arith.subf %232, %236 : f32
    %cst_105 = arith.constant 5.000000e-01 : f32
    %238 = arith.mulf %234, %cst_105 : f32
    %239 = arith.addf %232, %238 : f32
    %cst_106 = arith.constant 5.000000e-01 : f32
    %240 = arith.mulf %235, %cst_106 : f32
    %241 = arith.subf %233, %240 : f32
    %cst_107 = arith.constant 5.000000e-01 : f32
    %242 = arith.mulf %235, %cst_107 : f32
    %243 = arith.addf %233, %242 : f32
    %244 = arith.mulf %234, %235 : f32
    %245 = vector.broadcast %239 : f32 to vector<6x128xf32>
    %246 = arith.minimumf %245, %157 : vector<6x128xf32>
    %247 = vector.broadcast %237 : f32 to vector<6x128xf32>
    %248 = arith.maximumf %247, %154 : vector<6x128xf32>
    %249 = arith.subf %246, %248 : vector<6x128xf32>
    %cst_108 = arith.constant 0.000000e+00 : f32
    %250 = vector.broadcast %cst_108 : f32 to vector<6x128xf32>
    %251 = arith.maximumf %249, %250 : vector<6x128xf32>
    %252 = vector.broadcast %243 : f32 to vector<6x128xf32>
    %253 = arith.minimumf %252, %163 : vector<6x128xf32>
    %254 = vector.broadcast %241 : f32 to vector<6x128xf32>
    %255 = arith.maximumf %254, %160 : vector<6x128xf32>
    %256 = arith.subf %253, %255 : vector<6x128xf32>
    %cst_109 = arith.constant 0.000000e+00 : f32
    %257 = vector.broadcast %cst_109 : f32 to vector<6x128xf32>
    %258 = arith.maximumf %256, %257 : vector<6x128xf32>
    %259 = arith.mulf %251, %258 : vector<6x128xf32>
    %260 = vector.broadcast %244 : f32 to vector<6x128xf32>
    %261 = arith.addf %260, %164 : vector<6x128xf32>
    %262 = arith.subf %261, %259 : vector<6x128xf32>
    %263 = arith.divf %259, %262 : vector<6x128xf32>
    %264 = arith.maximumf %231, %263 : vector<6x128xf32>
    %cst_110 = arith.constant 5.000000e-01 : f32
    %265 = vector.broadcast %cst_110 : f32 to vector<6x128xf32>
    %266 = arith.cmpf ole, %264, %265 : vector<6x128xf32>
    %267 = arith.extui %266 : vector<6x128xi1> to vector<6x128xi32>
    %268 = arith.sitofp %267 : vector<6x128xi32> to vector<6x128xf32>
    %269 = vector.extract_strided_slice %93 {offsets = [0, 0], sizes = [6, 128], strides = [1, 1]} : vector<12x128xf32> to vector<6x128xf32>
    %270 = vector.extract_strided_slice %13 {offsets = [0, 0], sizes = [6, 128], strides = [1, 1]} : vector<12x128xf32> to vector<6x128xf32>
    %271 = arith.mulf %269, %270 : vector<6x128xf32>
    %272 = arith.mulf %271, %268 : vector<6x128xf32>
    %273 = vector.shape_cast %272 : vector<6x128xf32> to vector<1x6x128xf32>
    %cst_111 = arith.constant dense<0.000000e+00> : vector<1xf32>
    %274 = vector.multi_reduction <add>, %273, %cst_111 [1, 2] : vector<1x6x128xf32> to vector<1xf32>
    %275 = vector.shape_cast %274 : vector<1xf32> to vector<1x1x1xf32>
    %276 = vector.extract %275[0, 0, 0] : f32 from vector<1x1x1xf32>
    %cst_112 = arith.constant 0.000000e+00 : f32
    %277 = arith.addf %cst_112, %276 : f32
    %278 = vector.extract_strided_slice %1 {offsets = [6, 0], sizes = [6, 128], strides = [1, 1]} : vector<12x128xf32> to vector<6x128xf32>
    %cst_113 = arith.constant 0.000000e+00 : f32
    %279 = vector.broadcast %cst_113 : f32 to vector<6x128xf32>
    %280 = arith.subf %279, %278 : vector<6x128xf32>
    %281 = math.exp %280 : vector<6x128xf32>
    %cst_114 = arith.constant 1.000000e+00 : f32
    %282 = vector.broadcast %cst_114 : f32 to vector<6x128xf32>
    %283 = arith.addf %282, %281 : vector<6x128xf32>
    %cst_115 = arith.constant 1.000000e+00 : f32
    %284 = vector.broadcast %cst_115 : f32 to vector<6x128xf32>
    %285 = arith.divf %284, %283 : vector<6x128xf32>
    %286 = vector.extract_strided_slice %3 {offsets = [6, 0], sizes = [6, 128], strides = [1, 1]} : vector<12x128xf32> to vector<6x128xf32>
    %cst_116 = arith.constant 0.000000e+00 : f32
    %287 = vector.broadcast %cst_116 : f32 to vector<6x128xf32>
    %288 = arith.subf %287, %286 : vector<6x128xf32>
    %289 = math.exp %288 : vector<6x128xf32>
    %cst_117 = arith.constant 1.000000e+00 : f32
    %290 = vector.broadcast %cst_117 : f32 to vector<6x128xf32>
    %291 = arith.addf %290, %289 : vector<6x128xf32>
    %cst_118 = arith.constant 1.000000e+00 : f32
    %292 = vector.broadcast %cst_118 : f32 to vector<6x128xf32>
    %293 = arith.divf %292, %291 : vector<6x128xf32>
    %294 = arith.addf %285, %121 : vector<6x128xf32>
    %295 = arith.addf %293, %123 : vector<6x128xf32>
    %296 = vector.extract_strided_slice %5 {offsets = [6, 0], sizes = [6, 128], strides = [1, 1]} : vector<12x128xf32> to vector<6x128xf32>
    %297 = math.exp %296 : vector<6x128xf32>
    %298 = arith.mulf %297, %125 : vector<6x128xf32>
    %299 = vector.extract_strided_slice %7 {offsets = [6, 0], sizes = [6, 128], strides = [1, 1]} : vector<12x128xf32> to vector<6x128xf32>
    %300 = math.exp %299 : vector<6x128xf32>
    %301 = arith.mulf %300, %127 : vector<6x128xf32>
    %cst_119 = arith.constant 5.000000e-01 : f32
    %302 = vector.broadcast %cst_119 : f32 to vector<6x128xf32>
    %303 = arith.mulf %298, %302 : vector<6x128xf32>
    %304 = arith.subf %294, %303 : vector<6x128xf32>
    %cst_120 = arith.constant 5.000000e-01 : f32
    %305 = vector.broadcast %cst_120 : f32 to vector<6x128xf32>
    %306 = arith.mulf %298, %305 : vector<6x128xf32>
    %307 = arith.addf %294, %306 : vector<6x128xf32>
    %cst_121 = arith.constant 5.000000e-01 : f32
    %308 = vector.broadcast %cst_121 : f32 to vector<6x128xf32>
    %309 = arith.mulf %301, %308 : vector<6x128xf32>
    %310 = arith.subf %295, %309 : vector<6x128xf32>
    %cst_122 = arith.constant 5.000000e-01 : f32
    %311 = vector.broadcast %cst_122 : f32 to vector<6x128xf32>
    %312 = arith.mulf %301, %311 : vector<6x128xf32>
    %313 = arith.addf %295, %312 : vector<6x128xf32>
    %314 = arith.mulf %298, %301 : vector<6x128xf32>
    %cst_123 = arith.constant 0.000000e+00 : f32
    %315 = vector.broadcast %cst_123 : f32 to vector<6x128xf32>
    %c12 = arith.constant 12 : index
    %316 = memref.load %arg0[%c12] : memref<24xf32, #tpu.memory_space<smem>>
    %c13 = arith.constant 13 : index
    %317 = memref.load %arg0[%c13] : memref<24xf32, #tpu.memory_space<smem>>
    %c14 = arith.constant 14 : index
    %318 = memref.load %arg0[%c14] : memref<24xf32, #tpu.memory_space<smem>>
    %c15 = arith.constant 15 : index
    %319 = memref.load %arg0[%c15] : memref<24xf32, #tpu.memory_space<smem>>
    %cst_124 = arith.constant 5.000000e-01 : f32
    %320 = arith.mulf %318, %cst_124 : f32
    %321 = arith.subf %316, %320 : f32
    %cst_125 = arith.constant 5.000000e-01 : f32
    %322 = arith.mulf %318, %cst_125 : f32
    %323 = arith.addf %316, %322 : f32
    %cst_126 = arith.constant 5.000000e-01 : f32
    %324 = arith.mulf %319, %cst_126 : f32
    %325 = arith.subf %317, %324 : f32
    %cst_127 = arith.constant 5.000000e-01 : f32
    %326 = arith.mulf %319, %cst_127 : f32
    %327 = arith.addf %317, %326 : f32
    %328 = arith.mulf %318, %319 : f32
    %329 = vector.broadcast %323 : f32 to vector<6x128xf32>
    %330 = arith.minimumf %329, %307 : vector<6x128xf32>
    %331 = vector.broadcast %321 : f32 to vector<6x128xf32>
    %332 = arith.maximumf %331, %304 : vector<6x128xf32>
    %333 = arith.subf %330, %332 : vector<6x128xf32>
    %cst_128 = arith.constant 0.000000e+00 : f32
    %334 = vector.broadcast %cst_128 : f32 to vector<6x128xf32>
    %335 = arith.maximumf %333, %334 : vector<6x128xf32>
    %336 = vector.broadcast %327 : f32 to vector<6x128xf32>
    %337 = arith.minimumf %336, %313 : vector<6x128xf32>
    %338 = vector.broadcast %325 : f32 to vector<6x128xf32>
    %339 = arith.maximumf %338, %310 : vector<6x128xf32>
    %340 = arith.subf %337, %339 : vector<6x128xf32>
    %cst_129 = arith.constant 0.000000e+00 : f32
    %341 = vector.broadcast %cst_129 : f32 to vector<6x128xf32>
    %342 = arith.maximumf %340, %341 : vector<6x128xf32>
    %343 = arith.mulf %335, %342 : vector<6x128xf32>
    %344 = vector.broadcast %328 : f32 to vector<6x128xf32>
    %345 = arith.addf %344, %314 : vector<6x128xf32>
    %346 = arith.subf %345, %343 : vector<6x128xf32>
    %347 = arith.divf %343, %346 : vector<6x128xf32>
    %348 = arith.maximumf %315, %347 : vector<6x128xf32>
    %c16 = arith.constant 16 : index
    %349 = memref.load %arg0[%c16] : memref<24xf32, #tpu.memory_space<smem>>
    %c17 = arith.constant 17 : index
    %350 = memref.load %arg0[%c17] : memref<24xf32, #tpu.memory_space<smem>>
    %c18 = arith.constant 18 : index
    %351 = memref.load %arg0[%c18] : memref<24xf32, #tpu.memory_space<smem>>
    %c19 = arith.constant 19 : index
    %352 = memref.load %arg0[%c19] : memref<24xf32, #tpu.memory_space<smem>>
    %cst_130 = arith.constant 5.000000e-01 : f32
    %353 = arith.mulf %351, %cst_130 : f32
    %354 = arith.subf %349, %353 : f32
    %cst_131 = arith.constant 5.000000e-01 : f32
    %355 = arith.mulf %351, %cst_131 : f32
    %356 = arith.addf %349, %355 : f32
    %cst_132 = arith.constant 5.000000e-01 : f32
    %357 = arith.mulf %352, %cst_132 : f32
    %358 = arith.subf %350, %357 : f32
    %cst_133 = arith.constant 5.000000e-01 : f32
    %359 = arith.mulf %352, %cst_133 : f32
    %360 = arith.addf %350, %359 : f32
    %361 = arith.mulf %351, %352 : f32
    %362 = vector.broadcast %356 : f32 to vector<6x128xf32>
    %363 = arith.minimumf %362, %307 : vector<6x128xf32>
    %364 = vector.broadcast %354 : f32 to vector<6x128xf32>
    %365 = arith.maximumf %364, %304 : vector<6x128xf32>
    %366 = arith.subf %363, %365 : vector<6x128xf32>
    %cst_134 = arith.constant 0.000000e+00 : f32
    %367 = vector.broadcast %cst_134 : f32 to vector<6x128xf32>
    %368 = arith.maximumf %366, %367 : vector<6x128xf32>
    %369 = vector.broadcast %360 : f32 to vector<6x128xf32>
    %370 = arith.minimumf %369, %313 : vector<6x128xf32>
    %371 = vector.broadcast %358 : f32 to vector<6x128xf32>
    %372 = arith.maximumf %371, %310 : vector<6x128xf32>
    %373 = arith.subf %370, %372 : vector<6x128xf32>
    %cst_135 = arith.constant 0.000000e+00 : f32
    %374 = vector.broadcast %cst_135 : f32 to vector<6x128xf32>
    %375 = arith.maximumf %373, %374 : vector<6x128xf32>
    %376 = arith.mulf %368, %375 : vector<6x128xf32>
    %377 = vector.broadcast %361 : f32 to vector<6x128xf32>
    %378 = arith.addf %377, %314 : vector<6x128xf32>
    %379 = arith.subf %378, %376 : vector<6x128xf32>
    %380 = arith.divf %376, %379 : vector<6x128xf32>
    %381 = arith.maximumf %348, %380 : vector<6x128xf32>
    %c20 = arith.constant 20 : index
    %382 = memref.load %arg0[%c20] : memref<24xf32, #tpu.memory_space<smem>>
    %c21 = arith.constant 21 : index
    %383 = memref.load %arg0[%c21] : memref<24xf32, #tpu.memory_space<smem>>
    %c22 = arith.constant 22 : index
    %384 = memref.load %arg0[%c22] : memref<24xf32, #tpu.memory_space<smem>>
    %c23 = arith.constant 23 : index
    %385 = memref.load %arg0[%c23] : memref<24xf32, #tpu.memory_space<smem>>
    %cst_136 = arith.constant 5.000000e-01 : f32
    %386 = arith.mulf %384, %cst_136 : f32
    %387 = arith.subf %382, %386 : f32
    %cst_137 = arith.constant 5.000000e-01 : f32
    %388 = arith.mulf %384, %cst_137 : f32
    %389 = arith.addf %382, %388 : f32
    %cst_138 = arith.constant 5.000000e-01 : f32
    %390 = arith.mulf %385, %cst_138 : f32
    %391 = arith.subf %383, %390 : f32
    %cst_139 = arith.constant 5.000000e-01 : f32
    %392 = arith.mulf %385, %cst_139 : f32
    %393 = arith.addf %383, %392 : f32
    %394 = arith.mulf %384, %385 : f32
    %395 = vector.broadcast %389 : f32 to vector<6x128xf32>
    %396 = arith.minimumf %395, %307 : vector<6x128xf32>
    %397 = vector.broadcast %387 : f32 to vector<6x128xf32>
    %398 = arith.maximumf %397, %304 : vector<6x128xf32>
    %399 = arith.subf %396, %398 : vector<6x128xf32>
    %cst_140 = arith.constant 0.000000e+00 : f32
    %400 = vector.broadcast %cst_140 : f32 to vector<6x128xf32>
    %401 = arith.maximumf %399, %400 : vector<6x128xf32>
    %402 = vector.broadcast %393 : f32 to vector<6x128xf32>
    %403 = arith.minimumf %402, %313 : vector<6x128xf32>
    %404 = vector.broadcast %391 : f32 to vector<6x128xf32>
    %405 = arith.maximumf %404, %310 : vector<6x128xf32>
    %406 = arith.subf %403, %405 : vector<6x128xf32>
    %cst_141 = arith.constant 0.000000e+00 : f32
    %407 = vector.broadcast %cst_141 : f32 to vector<6x128xf32>
    %408 = arith.maximumf %406, %407 : vector<6x128xf32>
    %409 = arith.mulf %401, %408 : vector<6x128xf32>
    %410 = vector.broadcast %394 : f32 to vector<6x128xf32>
    %411 = arith.addf %410, %314 : vector<6x128xf32>
    %412 = arith.subf %411, %409 : vector<6x128xf32>
    %413 = arith.divf %409, %412 : vector<6x128xf32>
    %414 = arith.maximumf %381, %413 : vector<6x128xf32>
    %cst_142 = arith.constant 5.000000e-01 : f32
    %415 = vector.broadcast %cst_142 : f32 to vector<6x128xf32>
    %416 = arith.cmpf ole, %414, %415 : vector<6x128xf32>
    %417 = arith.extui %416 : vector<6x128xi1> to vector<6x128xi32>
    %418 = arith.sitofp %417 : vector<6x128xi32> to vector<6x128xf32>
    %419 = vector.extract_strided_slice %93 {offsets = [6, 0], sizes = [6, 128], strides = [1, 1]} : vector<12x128xf32> to vector<6x128xf32>
    %420 = vector.extract_strided_slice %13 {offsets = [6, 0], sizes = [6, 128], strides = [1, 1]} : vector<12x128xf32> to vector<6x128xf32>
    %421 = arith.mulf %419, %420 : vector<6x128xf32>
    %422 = arith.mulf %421, %418 : vector<6x128xf32>
    %423 = vector.shape_cast %422 : vector<6x128xf32> to vector<1x6x128xf32>
    %cst_143 = arith.constant dense<0.000000e+00> : vector<1xf32>
    %424 = vector.multi_reduction <add>, %423, %cst_143 [1, 2] : vector<1x6x128xf32> to vector<1xf32>
    %425 = vector.shape_cast %424 : vector<1xf32> to vector<1x1x1xf32>
    %426 = vector.extract %425[0, 0, 0] : f32 from vector<1x1x1xf32>
    %427 = arith.addf %277, %426 : f32
    %428 = arith.addf %98, %427 : f32
    %cst_144 = arith.constant 2.000000e+00 : f32
    %429 = arith.divf %428, %cst_144 : f32
    %430 = arith.addf %47, %65 : f32
    %431 = arith.addf %430, %73 : f32
    %432 = arith.addf %431, %81 : f32
    %433 = arith.addf %432, %429 : f32
    %434 = arith.addf %433, %119 : f32
    %c0_145 = arith.constant 0 : index
    %435 = memref.load %arg4[%c0_145] : memref<7xf32, #tpu.memory_space<smem>>
    memref.store %434, %arg4[%c0_145] : memref<7xf32, #tpu.memory_space<smem>>
    %c1_146 = arith.constant 1 : index
    %436 = memref.load %arg4[%c1_146] : memref<7xf32, #tpu.memory_space<smem>>
    memref.store %47, %arg4[%c1_146] : memref<7xf32, #tpu.memory_space<smem>>
    %c2_147 = arith.constant 2 : index
    %437 = memref.load %arg4[%c2_147] : memref<7xf32, #tpu.memory_space<smem>>
    memref.store %65, %arg4[%c2_147] : memref<7xf32, #tpu.memory_space<smem>>
    %c3_148 = arith.constant 3 : index
    %438 = memref.load %arg4[%c3_148] : memref<7xf32, #tpu.memory_space<smem>>
    memref.store %73, %arg4[%c3_148] : memref<7xf32, #tpu.memory_space<smem>>
    %c4_149 = arith.constant 4 : index
    %439 = memref.load %arg4[%c4_149] : memref<7xf32, #tpu.memory_space<smem>>
    memref.store %81, %arg4[%c4_149] : memref<7xf32, #tpu.memory_space<smem>>
    %c5_150 = arith.constant 5 : index
    %440 = memref.load %arg4[%c5_150] : memref<7xf32, #tpu.memory_space<smem>>
    memref.store %429, %arg4[%c5_150] : memref<7xf32, #tpu.memory_space<smem>>
    %c6_151 = arith.constant 6 : index
    %441 = memref.load %arg4[%c6_151] : memref<7xf32, #tpu.memory_space<smem>>
    memref.store %119, %arg4[%c6_151] : memref<7xf32, #tpu.memory_space<smem>>
    return
  }
}

</mosaic_0001>

<bundles_post_ra>
// kernel: _yolo_loss_device.1
= control target key start
LH: loop header
LB: loop body
LE: loop exit
PB: predicated region body
PF: predicated region fallthrough
CT: control target
= control target key end

     0   :  { %9 = vsyncpa [#allocation4], 0  ;;  %s1618_s0 = inlined_call_operand.vmem [shape: f32[24], index: 0, kind: input, shape index: {}]   ;;  %s1619_s1 = inlined_call_operand.vmem [shape: f32[9,12,128], index: 1, kind: input, shape index: {}]   ;;  %s1620_s2 = inlined_call_operand.vmem [shape: f32[12,12,128], index: 2, kind: input, shape index: {}]   ;;  %s1621_s3 = inlined_call_operand.vmem [shape: f32[4,6,128], index: 3, kind: input, shape index: {}]   ;;  %s1622_s4 = inlined_call_operand.hbm [shape: f32[7], index: 4, kind: output, shape index: {}]  }
   0x1   :  { %10 = vsyncpa [#allocation3], 0  ;;  %s17_s17 = sshll.u32 %s1618_s0, 4  ;;  %s18_s17 = int_to_ptr.vmem [resolvable:$true] %s17_s17 }
   0x2   :  { %s925_s18 = scalar_lea.vmem %s18_s17, 16  ;;  %p930_p1 = scmp.lt.s32.totalorder %s18_s17, %s18_s17 }
   0x3   :  { %p926_p0 = scmp.ne.s32.totalorder %s18_s17, %s925_s18  ;;  %p931_p2 = scmp.lt.s32.totalorder %s925_s18, %s925_s18 }
   0x5   :  { %p932_p3 = por %p931_p2, %p930_p1 }
   0x7   :  { %p933_p4 = pnand %p932_p3, %p926_p0 }
   0x9   :  { %936 = shalt.err (!%p933_p4)
}
   0xa   :  { %s951_s19 = smov [#allocation2]  }
   0xb   :  { %20 = dma.vmem_to_smem %s18_s17, 16, %s951_s19, [#allocation4]  }
   0xc   :  { %947 = dma.done.wait [#allocation4], 16  }
   0xd   :  { %948 = vsyncadd [#allocation4], 4294967280 }
   0xe   :  { %30 = sfence }
   0xf   :  { %v31_v0 = vld [vmem:[%s1619_s1] sm:$0xff]  ;;  %v32_v1 = vld [vmem:[%s1619_s1 + $0x8] sm:$0xf]  ;;  %v761_v8 = vld [vmem:[%s1620_s2 + $0x70] sm:$0xff]  ;;  %vm98_vm0 = vcmask 1043456   ;;  %s1202_s19 = sld [smem:[#allocation2 + $0x2]] }
  0x10   :  { %v751_v2 = vld [vmem:[%s1620_s2 + $0x20] sm:$0xff]  ;;  %v752_v3 = vld [vmem:[%s1620_s2 + $0x28] sm:$0xf]  ;;  %v74_v4 = vmax.f32 %v31_v0, 0.0  ;;  %v75_v9 = vmax.f32 %v32_v1, 0.0  ;;  %v361_v11 = vsub.f32 0.0, %v31_v0 }
  0x11   :  { %v997_v5 = vld [vmem:[%s1620_s2] sm:$0xff]  ;;  %v760_v7 = vld [vmem:[%s1620_s2 + $0x68] sm:$0xf]  ;;  %v76_v10 = vmul.f32 %v751_v2, %v31_v0  ;;  %v762_v13 = vld [vmem:[%s1620_s2 + $0x78] sm:$0xf]  ;;  %v77_v18 = vmul.f32 %v752_v3, %v32_v1  ;;  %v495_v27 = vsub.f32 0.0, %v32_v1 }
  0x12   :  { %v759_v6 = vld [vmem:[%s1620_s2 + $0x60] sm:$0xff]  ;;  %v1011_v12 = vld [vmem:[%s1620_s2 + $0x8] sm:$0xf]  ;;  %v80_v15 = vand.u32 2147483647, %v31_v0  ;;  %v69_v17 = vmul.f32 %v762_v13, %v760_v7  ;;  %v741_v40 = vld [vmem:[%s1619_s1 + $0x10] sm:$0xff] }
  0x13   :  { %v68_v14 = vmul.f32 %v761_v8, %v759_v6  ;;  %v81_v16 = vand.u32 2147483647, %v32_v1  ;;  %v1016_v19 = vsub.f32 %v74_v4, %v76_v10  ;;  %v362_v20 = vmul.f32 1.442695, %v361_v11  ;;  %v743_v21 = vld [vmem:[%s1619_s1 + $0x20] sm:$0xff]  ;;  %v753_v41 = vld [vmem:[%s1620_s2 + $0x30] sm:$0xff] }
  0x14   :  { %v744_v22 = vld [vmem:[%s1619_s1 + $0x28] sm:$0xf]  ;;  %v755_v23 = vld [vmem:[%s1620_s2 + $0x40] sm:$0xff]  ;;  %v82_v25 = vsub.f32 0.0, %v80_v15  ;;  %v71_v29 = vsub.f32 2.0, %v69_v17  ;;  %v1045_v43 = vsub.f32 %v75_v9, %v77_v18  ;;  %v113_v46 = vmax.f32 %v741_v40, 0.0 }
  0x15   :  { %v70_v24 = vsub.f32 2.0, %v68_v14  ;;  %v83_v26 = vsub.f32 0.0, %v81_v16  ;;  %v756_v28 = vld [vmem:[%s1620_s2 + $0x48] sm:$0xf]  ;;  %827 = vpow2.f32 %v362_v20  ;;  %v151_v30 = vsub.f32 %v743_v21, %v755_v23  ;;  %v754_v42 = vld [vmem:[%s1620_s2 + $0x38] sm:$0xf] }
  0x16   :  { %v152_v31 = vsub.f32 %v744_v22, %v756_v28  ;;  %v84_v33 = vmul.f32 1.442695, %v82_v25  ;;  %v496_v35 = vmul.f32 1.442695, %v495_v27  ;;  %v1034_v36 = vmul.f32 %v71_v29, %v1011_v12  ;;  %v742_v45 = vld [vmem:[%s1619_s1 + $0x18] sm:$0xf] }
  0x17   :  { %v1031_v32 = vmul.f32 %v70_v24, %v997_v5  ;;  %v86_v34 = vmul.f32 1.442695, %v83_v26  ;;  %v153_v37 = vmul.f32 %v151_v30, %v151_v30  ;;  %v375_v39 = vmul.f32 1.442695, %v743_v21  ;;  %v1055_v49 = vld [vmem:[%s1621_s3 + $0x10] sm:$0x3f] }
  0x18   :  { %v154_v38 = vmul.f32 %v152_v31, %v152_v31  ;;  %829 = vpow2.f32 %v84_v33  ;;  %v517_v44 = vmul.f32 1.442695, %v744_v22  ;;  %v114_v50 = vmax.f32 %v742_v45, 0.0  ;;  %v745_v54 = vld [vmem:[%s1619_s1 + $0x30] sm:$0xff]  ;;  %v758_v59 = vld [vmem:[%s1620_s2 + $0x58] sm:$0xf] }
  0x19   :  { %831 = vpow2.f32 %v86_v34  ;;  %v155_v47 = vmul.f32 %v153_v37, %v1031_v32  ;;  %v115_v51 = vmul.f32 %v753_v41, %v741_v40  ;;  %v116_v52 = vmul.f32 %v754_v42, %v742_v45  ;;  %v757_v55 = vld [vmem:[%s1620_s2 + $0x50] sm:$0xff]  ;;  %v746_v63 = vld [vmem:[%s1619_s1 + $0x38] sm:$0xf]  ;;  %v771_v10 = vld [vmem:[%s1620_s2 + $0x80] sm:$0xff]  ;;  %s1204_s20 = sld [smem:[#allocation2 + $0x3]]  ;;  %s1224_s21 = sld [smem:[#allocation2]] }
  0x1a   :  { %v156_v48 = vmul.f32 %v154_v38, %v1034_v36  ;;  %833 = vpow2.f32 %v496_v35  ;;  %v119_v53 = vand.u32 2147483647, %v741_v40  ;;  %v120_v57 = vand.u32 2147483647, %v742_v45  ;;  %v1078_v8 = vld [vmem:[%s1621_s3 + $0x18] sm:$0x3f] }
  0x1b   :  { %835 = vpow2.f32 %v375_v39  ;;  %v367_v58 = vsub.f32 0.0, %v741_v40  ;;  %v520_v61 = vrot.slane %v1055_v49, 2  ;;  %v1068_v62 = vsub.f32 %v113_v46, %v115_v51  ;;  %v1086_v20 = vld [vmem:[%s1619_s1 + $0x50] sm:$0xff]  ;;  %v1095_v27 = vld [vmem:[%s1619_s1 + $0x58] sm:$0xf]  ;;  %v1100_v28 = vld [vmem:[%s1619_s1 + $0x60] sm:$0xff] }
  0x1c   :  { %v157_v56 = vsel %vm98_vm0, %v156_v48, 0.0  ;;  %837 = vpow2.f32 %v517_v44  ;;  %v121_v0 = vsub.f32 0.0, %v119_v53  ;;  %v122_v1 = vsub.f32 0.0, %v120_v57  ;;  %v1105_v29 = vld [vmem:[%s1619_s1 + $0x68] sm:$0xf]  ;;  %v1119_v41 = vld [vmem:[%s1619_s1 + $0x70] sm:$0xff] }
  0x1d   :  { %v158_v60 = vadd.f32 %v157_v56, %v155_v47  ;;  %v368_v2 = vmul.f32 1.442695, %v367_v58  ;;  %v501_v3 = vsub.f32 0.0, %v742_v45  ;;  %v1073_v4 = vsub.f32 %v114_v50, %v116_v52  ;;  %v1111_v34 = vld [vmem:[%s1619_s1 + $0x78] sm:$0xf]  ;;  %v1128_v48 = vld [vmem:[%s1619_s1 + $0x80] sm:$0xff] }
  0x1e   :  { %v169_v6 = vsub.f32 %v745_v54, %v757_v55  ;;  %v170_v7 = vsub.f32 %v746_v63, %v758_v59  ;;  %v378_v9 = vmul.f32 1.442695, %v745_v54  ;;  %v123_v13 = vmul.f32 1.442695, %v121_v0  ;;  %v772_v42 = vld [vmem:[%s1620_s2 + $0x88] sm:$0xf] }
  0x1f   :  { %159 = vadd.xlane.f32.xlu1 %v158_v60  ;;  %v828_v11 = vpop.eup %827  ;;  %v125_v14 = vmul.f32 1.442695, %v122_v1  ;;  %839 = vpow2.f32 %v368_v2  ;;  %v502_v15 = vmul.f32 1.442695, %v501_v3  ;;  %v524_v21 = vmul.f32 1.442695, %v746_v63  ;;  %s398_s17 = smul.f32 %s1204_s20, %s1202_s19 }
  0x20   :  { %v364_v16 = vadd.f32 1.0, %v828_v11  ;;  %v171_v17 = vmul.f32 %v169_v6, %v169_v6  ;;  %v172_v18 = vmul.f32 %v170_v7, %v170_v7  ;;  %841 = vpow2.f32 %v378_v9  ;;  %v773_v50 = vld [vmem:[%s1620_s2 + $0x90] sm:$0xff]  ;;  %v774_v51 = vld [vmem:[%s1620_s2 + $0x98] sm:$0xf]  ;;  %v775_v56 = vld [vmem:[%s1620_s2 + $0xa0] sm:$0xff]  ;;  %s1231_s22 = sld [smem:[#allocation2 + $0x1]] }
  0x21   :  { %843 = vpow2.f32 %v123_v13  ;;  %v527_v22 = vrot.slane %v1078_v8, 2  ;;  %v240_v23 = vmax.f32 %v1086_v20, 0.0  ;;  %v248_v30 = vmul.f32 %v771_v10, %v1086_v20  ;;  %v776_v57 = vld [vmem:[%s1620_s2 + $0xa8] sm:$0xf]  ;;  %v777_v58 = vld [vmem:[%s1620_s2 + $0xb0] sm:$0xff]  ;;  %s392_s26 = smul.f32 0.5, %s1202_s19 }
  0x22   :  { %v830_v24 = vpop.eup %829  ;;  %845 = vrcp.f32 %v364_v16  ;;  %v173_v25 = vmul.f32 %v171_v17, %v1031_v32  ;;  %v174_v26 = vmul.f32 %v172_v18, %v1034_v36  ;;  %v241_v35 = vmax.f32 %v1095_v27, 0.0  ;;  %v1161_v63 = vld [vmem:[%s1619_s1 + $0x88] sm:$0xf]  ;;  %v778_v0 = vld [vmem:[%s1620_s2 + $0xb8] sm:$0xf]  ;;  %s1247_s27 = sld [smem:[#allocation2 + $0x6]] }
  0x23   :  { %v832_v31 = vpop.eup %831  ;;  %v88_v33 = vadd.f32 1.0, %v830_v24  ;;  %847 = vpow2.f32 %v125_v14  ;;  %v242_v37 = vmax.f32 %v1100_v28, 0.0  ;;  %v243_v44 = vmax.f32 %v1105_v29, 0.0  ;;  %s395_s30 = smul.f32 0.5, %s1204_s20  ;;  %s1262_s5 = sld [smem:[#allocation2 + $0x7]] }
  0x24   :  { %v834_v38 = vpop.eup %833  ;;  %v89_v39 = vadd.f32 1.0, %v832_v31  ;;  %849 = vpow2.f32 %v502_v15  ;;  %v175_v40 = vsel %vm98_vm0, %v174_v26, 0.0  ;;  %v244_v52 = vmax.f32 %v1119_v41, 0.0  ;;  %s1276_s6 = ssub.f32 %s1224_s21, %s392_s26  ;;  %s1293_s10 = sld [smem:[#allocation2 + $0x5]] }
  0x25   :  { %v836_v45 = vpop.eup %835  ;;  %851 = vlog2.f32 %v88_v33  ;;  %v498_v46 = vadd.f32 1.0, %v834_v38  ;;  %v176_v47 = vadd.f32 %v175_v40, %v173_v25  ;;  %v245_v59 = vmax.f32 %v1111_v34, 0.0  ;;  %s1287_s9 = sadd.f32 %s392_s26, %s1224_s21  ;;  %s1295_s11 = sld [smem:[#allocation2 + $0xa]] }
  0x26   :  { %v838_v53 = vpop.eup %837  ;;  %853 = vlog2.f32 %v89_v39  ;;  %v1138_v54 = vmul.f32 %v836_v45, %v1055_v49  ;;  %v1142_v55 = vmul.f32 %v836_v45, %v520_v61  ;;  %v246_v1 = vmax.f32 %v1128_v48, 0.0  ;;  %s1309_s13 = sld [smem:[#allocation2 + $0xb]]  ;;  %s1317_s14 = ssub.f32 %s1231_s22, %s395_s30 }
  0x27   :  { %855 = vrcp.f32 %v498_v46  ;;  %v1156_v60 = vmul.f32 %v838_v53, %v520_v61  ;;  %177 = vadd.xlane.f32.xlu1 %v176_v47  ;;  %v249_v2 = vmul.f32 %v772_v42, %v1095_v27  ;;  %v247_v3 = vmax.f32 %v1161_v63, 0.0  ;;  %s1328_s16 = sld [smem:[#allocation2 + $0x8]]  ;;  %s1343_s21 = sld [smem:[#allocation2 + $0x9]] }
  0x28   :  { %857 = vpow2.f32 %v524_v21  ;;  %v250_v49 = vmul.f32 %v773_v50, %v1100_v28  ;;  %v251_v61 = vmul.f32 %v774_v51, %v1105_v29  ;;  %v1172_v7 = vmul.f32 0.5, %v1142_v55  ;;  %s422_s12 = smul.f32 0.5, %s1247_s27  ;;  %s1406_s29 = sld [smem:[#allocation2 + $0xe]] }
  0x29   :  { %v840_v6 = vpop.eup %839  ;;  %v252_v9 = vmul.f32 %v775_v56, %v1119_v41  ;;  %v253_v10 = vmul.f32 %v776_v57, %v1111_v34  ;;  %v254_v11 = vmul.f32 %v777_v58, %v1128_v48  ;;  %v1180_v14 = vmul.f32 0.5, %v1156_v60  ;;  %s425_s15 = smul.f32 0.5, %s1262_s5  ;;  %s1426_s7 = sld [smem:[#allocation2 + $0xd]] }
  0x2a   :  { %v1177_v13 = vpop.eup %841  ;;  %v370_v15 = vadd.f32 1.0, %v840_v6  ;;  %v255_v16 = vmul.f32 %v778_v0, %v1161_v63  ;;  %v1183_v17 = vsub.f32 %v240_v23, %v248_v30  ;;  %v1190_v24 = vsub.f32 %v241_v35, %v249_v2  ;;  %s428_s24 = smul.f32 %s1262_s5, %s1247_s27  ;;  %s1419_s5 = sld [smem:[#allocation2 + $0xc]] }
  0x2b   :  { %v844_v18 = vpop.eup %843  ;;  %v1188_v21 = vmul.f32 %v1177_v13, %v527_v22  ;;  %v1192_v25 = vsub.f32 %v242_v37, %v250_v49  ;;  %v1194_v26 = vsub.f32 %v243_v44, %v251_v61  ;;  %v1198_v38 = vsub.f32 %v244_v52, %v252_v9  ;;  %s1356_s20 = ssub.f32 %s1293_s10, %s425_s15 }
  0x2c   :  { %v1196_v31 = vpop.eup %845  ;;  %v127_v33 = vadd.f32 1.0, %v844_v18  ;;  %859 = vrcp.f32 %v370_v15  ;;  %v1200_v23 = vsub.f32 %v245_v59, %v253_v10  ;;  %v1209_v37 = vsub.f32 %v246_v1, %v254_v11  ;;  %v747_v11 = vld [vmem:[%s1619_s1 + $0x40] sm:$0xff]  ;;  %s427_s23 = sadd.f32 %s1293_s10, %s425_s15  ;;  %s455_s0 = smul.f32 0.5, %s1309_s13 }
  0x2d   :  { %v848_v30 = vpop.eup %847  ;;  %v1207_v35 = vmul.f32 0.5, %v1188_v21  ;;  %v264_v39 = vand.u32 2147483647, %v1086_v20  ;;  %v265_v40 = vand.u32 2147483647, %v1095_v27  ;;  %v1215_v50 = vsub.f32 %v247_v3, %v255_v16  ;;  %s458_s28 = smul.f32 %s1309_s13, %s1295_s11 }
  0x2e   :  { %v850_v42 = vpop.eup %849  ;;  %v128_v44 = vadd.f32 1.0, %v848_v30  ;;  %861 = vlog2.f32 %v127_v33  ;;  %v266_v45 = vand.u32 2147483647, %v1100_v28  ;;  %v267_v46 = vand.u32 2147483647, %v1105_v29  ;;  %s457_s27 = sadd.f32 %s1343_s21, %s455_s0  ;;  %s549_s10 = smul.f32 0.5, %s1406_s29 }
  0x2f   :  { %v852_v47 = vpop.eup %851  ;;  %v268_v51 = vand.u32 2147483647, %v1119_v41  ;;  %v269_v52 = vand.u32 2147483647, %v1111_v34  ;;  %v272_v53 = vsub.f32 0.0, %v264_v39  ;;  %v504_v59 = vadd.f32 1.0, %v850_v42 }
  0x30   :  { %v854_v56 = vpop.eup %853  ;;  %v91_v57 = vmul.f32 0.6931472, %v852_v47  ;;  %863 = vlog2.f32 %v128_v44  ;;  %v270_v20 = vand.u32 2147483647, %v1128_v48  ;;  %v271_v27 = vand.u32 2147483647, %v1161_v63  ;;  %s1460_s13 = ssub.f32 %s1419_s5, %s549_s10 }
  0x31   :  { %v1221_v58 = vpop.eup %855  ;;  %v93_v28 = vmul.f32 0.6931472, %v854_v56  ;;  %v273_v29 = vsub.f32 0.0, %v265_v40  ;;  %v274_v0 = vsub.f32 0.0, %v266_v45  ;;  %v275_v41 = vsub.f32 0.0, %v267_v46  ;;  %s551_s15 = sadd.f32 %s1419_s5, %s549_s10 }
  0x32   :  { %v858_v1 = vpop.eup %857  ;;  %v94_v2 = vadd.f32 %v91_v57, %v1016_v19  ;;  %v276_v3 = vsub.f32 0.0, %v268_v51  ;;  %v277_v34 = vsub.f32 0.0, %v269_v52  ;;  %v278_v63 = vsub.f32 0.0, %v270_v20  ;;  %v1259_v52 = vld [vmem:[%s1621_s3] sm:$0x3f] }
  0x33   :  { %v95_v49 = vadd.f32 %v93_v28, %v1045_v43  ;;  %v1229_v48 = vmul.f32 %v858_v1, %v527_v22  ;;  %v279_v61 = vsub.f32 0.0, %v271_v27  ;;  %v280_v9 = vmul.f32 1.442695, %v272_v53  ;;  %v1240_v43 = vld [vmem:[%s1619_s1 + $0x48] sm:$0xf]  ;;  %s1252_s1 = sld [smem:[#allocation2 + $0x4]] }
  0x34   :  { %v96_v6 = vmul.f32 %v94_v2, %v1031_v32  ;;  %v282_v19 = vmul.f32 1.442695, %v273_v29  ;;  %v284_v10 = vmul.f32 1.442695, %v274_v0  ;;  %865 = vrcp.f32 %v504_v59  ;;  %v1282_v2 = vld [vmem:[%s1621_s3 + $0x8] sm:$0x3f]  ;;  %s1302_s3 = sadd.f32 %s1231_s22, %s395_s30 }
  0x35   :  { %v97_v22 = vmul.f32 %v95_v49, %v1034_v36  ;;  %v1244_v15 = vmul.f32 0.5, %v1229_v48  ;;  %v286_v16 = vmul.f32 1.442695, %v275_v41  ;;  %867 = vpow2.f32 %v280_v9  ;;  %s452_s22 = smul.f32 0.5, %s1295_s11  ;;  %s1413_s30 = sld [smem:[#allocation2 + $0xf]] }
  0x36   :  { %v1249_v18 = vpop.eup %859  ;;  %v288_v33 = vmul.f32 1.442695, %v276_v3  ;;  %v290_v30 = vmul.f32 1.442695, %v277_v34  ;;  %v292_v39 = vmul.f32 1.442695, %v278_v63  ;;  %869 = vpow2.f32 %v282_v19 }
  0x37   :  { %v99_v40 = vsel %vm98_vm0, %v97_v22, 0.0  ;;  %v294_v42 = vmul.f32 1.442695, %v279_v61  ;;  %v187_v44 = vmax.f32 %v747_v11, 0.0  ;;  %871 = vpow2.f32 %v284_v10  ;;  %s454_s25 = sadd.f32 %s1328_s16, %s452_s22  ;;  %s1435_s11 = sld [smem:[#allocation2 + $0x13]] }
  0x38   :  { %v862_v45 = vpop.eup %861  ;;  %v100_v46 = vadd.f32 %v99_v40, %v96_v6  ;;  %v188_v47 = vmax.f32 %v1240_v43, 0.0  ;;  %v189_v51 = vmul.f32 %v747_v11, %v997_v5  ;;  %873 = vpow2.f32 %v286_v16  ;;  %s1377_s26 = ssub.f32 %s1328_s16, %s452_s22 }
  0x39   :  { %v130_v53 = vmul.f32 0.6931472, %v862_v45  ;;  %v193_v56 = vand.u32 2147483647, %v747_v11  ;;  %v194_v57 = vand.u32 2147483647, %v1240_v43  ;;  %875 = vpow2.f32 %v288_v33  ;;  %s1339_s18 = sadd.f32 %s1252_s1, %s422_s12 }
  0x3a   :  { %v864_v20 = vpop.eup %863  ;;  %101 = vadd.xlane.f32.xlu0 %v100_v46  ;;  %v1267_v27 = vmul.f32 %v1240_v43, %v1011_v12  ;;  %v1269_v28 = vsub.f32 %v187_v44, %v189_v51  ;;  %v373_v59 = vadd.f32 %v1196_v31, %v1259_v52  ;;  %877 = vpow2.f32 %v290_v30  ;;  %s1350_s19 = ssub.f32 %s1252_s1, %s422_s12 }
  0x3b   :  { %v132_v29 = vmul.f32 0.6931472, %v864_v20  ;;  %v133_v0 = vadd.f32 %v130_v53, %v1068_v62  ;;  %v195_v1 = vsub.f32 0.0, %v193_v56  ;;  %879 = vpow2.f32 %v292_v39  ;;  %s1395_s1 = ssub.f32 %s1343_s21, %s455_s0  ;;  %s552_s12 = smul.f32 0.5, %s1413_s30 }
  0x3c   :  { %v196_v41 = vsub.f32 0.0, %v194_v57  ;;  %v374_v3 = vadd.f32 %v1249_v18, %v1282_v2  ;;  %v380_v34 = vmul.f32 %v1177_v13, %v1078_v8  ;;  %881 = vpow2.f32 %v294_v42  ;;  %s555_s22 = smul.f32 %s1413_s30, %s1406_s29  ;;  %s1523_s0 = sld [smem:[#allocation2 + $0x14]] }
  0x3d   :  { %v134_v62 = vadd.f32 %v132_v29, %v1073_v4  ;;  %v135_v49 = vmul.f32 %v133_v0, %v1031_v32  ;;  %v197_v63 = vmul.f32 1.442695, %v195_v1  ;;  %v381_v8 = vmul.f32 0.5, %v1138_v54  ;;  %s554_s21 = sadd.f32 %s1426_s7, %s552_s12 }
  0x3e   :  { %v199_v61 = vmul.f32 1.442695, %v196_v41  ;;  %v384_v13 = vmul.f32 0.5, %v380_v34  ;;  %v1307_v6 = vmul.f32 %v380_v34, %v1138_v54  ;;  %v1311_v4 = vpop.eup %865  ;;  %v399_v9 = vstv %s1287_s9 }
  0x3f   :  { %v136_v32 = vmul.f32 %v134_v62, %v1034_v36  ;;  %883 = vpow2.f32 %v197_v63  ;;  %v401_v19 = vstv %s1276_s6  ;;  %v868_v10 = vpop.eup %867  ;;  %v1321_v54 = vsub.f32 %v373_v59, %v381_v8  ;;  %s1423_s6 = sld [smem:[#allocation2 + $0x12]] }
  0x40   :  { %885 = vpow2.f32 %v199_v61  ;;  %v1323_v11 = vadd.f32 %v381_v8, %v373_v59  ;;  %v1325_v22 = vsub.f32 %v374_v3, %v384_v13  ;;  %v870_v36 = vpop.eup %869  ;;  %v296_v33 = vadd.f32 1.0, %v868_v10 }
  0x41   :  { %v137_v16 = vsel %vm98_vm0, %v136_v32, 0.0  ;;  %v1331_v30 = vadd.f32 %v384_v13, %v374_v3  ;;  %v405_v39 = vstv %s1302_s3  ;;  %v872_v40 = vpop.eup %871  ;;  %v297_v44 = vadd.f32 1.0, %v870_v36  ;;  %s1441_s3 = sld [smem:[#allocation2 + $0x10]] }
  0x42   :  { %v138_v42 = vadd.f32 %v137_v16, %v135_v49  ;;  %v400_v45 = vmin.f32 %v399_v9, %v1323_v11  ;;  %v402_v46 = vmax.f32 %v401_v19, %v1321_v54  ;;  %v874_v51 = vpop.eup %873  ;;  %v298_v53 = vadd.f32 1.0, %v872_v40 }
  0x43   :  { %887 = vlog2.f32 %v296_v33  ;;  %v406_v56 = vmin.f32 %v405_v39, %v1331_v30  ;;  %v407_v57 = vstv %s1317_s14  ;;  %v876_v20 = vpop.eup %875  ;;  %v299_v59 = vadd.f32 1.0, %v874_v51  ;;  %s1462_s14 = sld [smem:[#allocation2 + $0x11]] }
  0x44   :  { %139 = vadd.xlane.f32.xlu0 %v138_v42  ;;  %889 = vlog2.f32 %v297_v44  ;;  %v403_v29 = vsub.f32 %v400_v45, %v402_v46  ;;  %v408_v0 = vmax.f32 %v407_v57, %v1325_v22  ;;  %v878_v1 = vpop.eup %877  ;;  %v300_v41 = vadd.f32 1.0, %v876_v20 }
  0x45   :  { %891 = vlog2.f32 %v298_v53  ;;  %v412_v3 = vstv %s398_s17  ;;  %v429_v34 = vstv %s1339_s18  ;;  %v880_v62 = vpop.eup %879  ;;  %v301_v49 = vadd.f32 1.0, %v878_v1  ;;  %s593_s16 = smul.f32 0.5, %s1423_s6  ;;  %s1479_s17 = ssub.f32 %s1426_s7, %s552_s12 }
  0x46   :  { %893 = vlog2.f32 %v299_v59  ;;  %v404_v63 = vmax.f32 %v403_v29, 0.0  ;;  %v409_v61 = vsub.f32 %v406_v56, %v408_v0  ;;  %v882_v8 = vpop.eup %881  ;;  %v302_v13 = vadd.f32 1.0, %v880_v62  ;;  %s1481_s18 = sld [smem:[#allocation2 + $0x16]] }
  0x47   :  { %895 = vlog2.f32 %v300_v41  ;;  %v413_v32 = vadd.f32 %v412_v3, %v1307_v6  ;;  %v430_v9 = vmin.f32 %v429_v34, %v1323_v11  ;;  %v303_v19 = vadd.f32 1.0, %v882_v8 }
  0x48   :  { %897 = vlog2.f32 %v301_v49  ;;  %v410_v10 = vmax.f32 %v409_v61, 0.0  ;;  %v431_v36 = vstv %s1350_s19  ;;  %v435_v39 = vstv %s427_s23  ;;  %s596_s19 = smul.f32 0.5, %s1435_s11  ;;  %s1518_s23 = sadd.f32 %s1441_s3, %s593_s16 }
  0x49   :  { %v884_v16 = vpop.eup %883  ;;  %899 = vlog2.f32 %v302_v13  ;;  %v432_v33 = vmax.f32 %v431_v36, %v1321_v54  ;;  %v437_v40 = vstv %s1356_s20  ;;  %v436_v46 = vmin.f32 %v435_v39, %v1331_v30  ;;  %s1501_s20 = sld [smem:[#allocation2 + $0x17]] }
  0x4a   :  { %v886_v42 = vpop.eup %885  ;;  %901 = vlog2.f32 %v303_v19  ;;  %v201_v44 = vadd.f32 1.0, %v884_v16  ;;  %v1379_v45 = vmul.f32 %v410_v10, %v404_v63  ;;  %v1388_v51 = vsub.f32 %v188_v47, %v1267_v27 }
  0x4b   :  { %v202_v53 = vadd.f32 1.0, %v886_v42  ;;  %v433_v56 = vsub.f32 %v430_v9, %v432_v33  ;;  %v438_v57 = vmax.f32 %v437_v40, %v1325_v22  ;;  %v442_v59 = vstv %s428_s24  ;;  %s1531_s24 = ssub.f32 %s1441_s3, %s593_s16 }
  0x4c   :  { %903 = vlog2.f32 %v201_v44  ;;  %v414_v20 = vsub.f32 %v413_v32, %v1379_v45  ;;  %v459_v29 = vstv %s454_s25  ;;  %v461_v3 = vstv %s1377_s26  ;;  %s598_s25 = sadd.f32 %s1462_s14, %s596_s19  ;;  %s1540_s26 = sld [smem:[#allocation2 + $0x15]] }
  0x4d   :  { %v888_v0 = vpop.eup %887  ;;  %905 = vlog2.f32 %v202_v53  ;;  %v434_v43 = vmax.f32 %v433_v56, 0.0  ;;  %v439_v47 = vsub.f32 %v436_v46, %v438_v57  ;;  %v460_v27 = vmin.f32 %v459_v29, %v1323_v11 }
  0x4e   :  { %v890_v1 = vpop.eup %889  ;;  %v305_v41 = vmul.f32 0.6931472, %v888_v0  ;;  %907 = vrcp.f32 %v414_v20  ;;  %v465_v34 = vstv %s457_s27  ;;  %v443_v61 = vadd.f32 %v442_v59, %v1307_v6  ;;  %s597_s27 = ssub.f32 %s1462_s14, %s596_s19 }
  0x4f   :  { %v892_v62 = vpop.eup %891  ;;  %v307_v49 = vmul.f32 0.6931472, %v890_v1  ;;  %v440_v63 = vmax.f32 %v439_v47, 0.0  ;;  %v462_v8 = vmax.f32 %v461_v3, %v1321_v54  ;;  %v466_v11 = vmin.f32 %v465_v34, %v1331_v30  ;;  %s640_s29 = smul.f32 0.5, %s1501_s20 }
  0x50   :  { %v894_v13 = vpop.eup %893  ;;  %v309_v32 = vmul.f32 0.6931472, %v892_v62  ;;  %v320_v9 = vadd.f32 %v305_v41, %v1183_v17  ;;  %v467_v19 = vstv %s1395_s1  ;;  %v472_v46 = vstv %s458_s28  ;;  %v749_v62 = vld [vmem:[%s1620_s2 + $0x10] sm:$0xff]  ;;  %s637_s1 = smul.f32 0.5, %s1481_s18 }
  0x51   :  { %v896_v10 = vpop.eup %895  ;;  %v311_v36 = vmul.f32 0.6931472, %v894_v13  ;;  %v321_v16 = vadd.f32 %v307_v49, %v1190_v24  ;;  %v1409_v33 = vmul.f32 %v440_v63, %v434_v43  ;;  %v463_v39 = vsub.f32 %v460_v27, %v462_v8  ;;  %s599_s28 = smul.f32 %s1435_s11, %s1423_s6 }
  0x52   :  { %v898_v40 = vpop.eup %897  ;;  %v313_v42 = vmul.f32 0.6931472, %v896_v10  ;;  %v322_v54 = vadd.f32 %v309_v32, %v1192_v25  ;;  %v468_v44 = vmax.f32 %v467_v19, %v1325_v22  ;;  %v473_v49 = vadd.f32 %v472_v46, %v1307_v6  ;;  %s1565_s30 = ssub.f32 %s1523_s0, %s637_s1  ;;  %s643_s8 = smul.f32 %s1501_s20, %s1481_s18 }
  0x53   :  { %v900_v17 = vpop.eup %899  ;;  %v315_v30 = vmul.f32 0.6931472, %v898_v40  ;;  %v323_v53 = vadd.f32 %v311_v36, %v1194_v26  ;;  %v331_v56 = vsel %vm98_vm0, %v321_v16, 0.0  ;;  %v444_v24 = vsub.f32 %v443_v61, %v1409_v33  ;;  %s639_s5 = sadd.f32 %s1523_s0, %s637_s1 }
  0x54   :  { %v902_v57 = vpop.eup %901  ;;  %v317_v20 = vmul.f32 0.6931472, %v900_v17  ;;  %v324_v59 = vadd.f32 %v313_v42, %v1198_v38  ;;  %v328_v29 = vadd.f32 %v322_v54, %v320_v9  ;;  %v464_v0 = vmax.f32 %v463_v39, 0.0  ;;  %s642_s6 = sadd.f32 %s1540_s26, %s640_s29 }
  0x55   :  { %v319_v25 = vmul.f32 0.6931472, %v902_v57  ;;  %v325_v22 = vadd.f32 %v315_v30, %v1200_v23  ;;  %v332_v43 = vsel %vm98_vm0, %v323_v53, 0.0  ;;  %909 = vrcp.f32 %v444_v24  ;;  %s641_s7 = ssub.f32 %s1540_s26, %s640_s29 }
  0x56   :  { %v904_v26 = vpop.eup %903  ;;  %v326_v47 = vadd.f32 %v317_v20, %v1209_v37  ;;  %v329_v27 = vadd.f32 %v328_v29, %v324_v59  ;;  %v333_v1 = vadd.f32 %v332_v43, %v331_v56  ;;  %v469_v41 = vsub.f32 %v466_v11, %v468_v44 }
  0x57   :  { %v906_v38 = vpop.eup %905  ;;  %v327_v3 = vadd.f32 %v319_v25, %v1215_v50  ;;  %v334_v34 = vsel %vm98_vm0, %v325_v22, 0.0  ;;  %v204_v23 = vmul.f32 0.6931472, %v904_v26  ;;  %v508_v11 = vrot.slane %v1259_v52, 2 }
  0x58   :  { %v908_v63 = vpop.eup %907  ;;  %v330_v37 = vadd.f32 %v329_v27, %v326_v47  ;;  %v335_v61 = vadd.f32 %v334_v34, %v333_v1  ;;  %v206_v8 = vmul.f32 0.6931472, %v906_v38  ;;  %v470_v13 = vmax.f32 %v469_v41, 0.0 }
  0x59   :  { %v336_v50 = vsel %vm98_vm0, %v327_v3, 0.0  ;;  %v207_v32 = vadd.f32 %v204_v23, %v1269_v28  ;;  %v416_v9 = vmul.f32 %v908_v63, %v1379_v45  ;;  %v513_v52 = vrot.slane %v1282_v2, 2 }
  0x5a   :  { %v337_v6 = vadd.f32 %v336_v50, %v335_v61  ;;  %v338_v19 = vmul.f32 %v330_v37, %v997_v5  ;;  %v1445_v10 = vadd.f32 %v206_v8, %v1388_v51  ;;  %v1447_v36 = vmul.f32 %v470_v13, %v464_v0 }
  0x5b   :  { %v209_v28 = vmul.f32 %v207_v32, %v997_v5  ;;  %v417_v16 = vmax.f32 %v416_v9, 0.0  ;;  %v1451_v45 = vmul.f32 %v749_v62, %v207_v32  ;;  %v510_v42 = vadd.f32 %v1196_v31, %v508_v11 }
  0x5c   :  { %v339_v39 = vmul.f32 %v337_v6, %v1011_v12  ;;  %v210_v40 = vmul.f32 %v1445_v10, %v1011_v12  ;;  %v474_v51 = vsub.f32 %v473_v49, %v1447_v36  ;;  %v511_v5 = vadd.f32 %v1221_v58, %v508_v11 }
  0x5d   :  { %v515_v54 = vadd.f32 %v1249_v18, %v513_v52  ;;  %v516_v2 = vadd.f32 %v1311_v4, %v513_v52  ;;  %v1469_v44 = vmul.f32 %v1188_v21, %v1142_v55  ;;  %v1476_v46 = vsub.f32 %v510_v42, %v1172_v7 }
  0x5e   :  { %v340_v12 = vsel %vm98_vm0, %v339_v39, 0.0  ;;  %v211_v31 = vsel %vm98_vm0, %v210_v40, 0.0  ;;  %911 = vrcp.f32 %v474_v51  ;;  %v1484_v21 = vsub.f32 %v511_v5, %v1180_v14 }
  0x5f   :  { %v910_v58 = vpop.eup %909  ;;  %v341_v18 = vadd.f32 %v340_v12, %v338_v19  ;;  %v212_v55 = vadd.f32 %v211_v31, %v209_v28  ;;  %v1487_v4 = vadd.f32 %v1172_v7, %v510_v42  ;;  %v1492_v30 = vadd.f32 %v1180_v14, %v511_v5 }
  0x60   :  { %v446_v17 = vmul.f32 %v910_v58, %v1409_v33  ;;  %v1495_v53 = vsub.f32 %v515_v54, %v1207_v35  ;;  %v1498_v56 = vsub.f32 %v516_v2, %v1244_v15  ;;  %v1504_v7 = vadd.f32 %v1207_v35, %v515_v54 }
  0x61   :  { %342 = vadd.xlane.f32.xlu1 %v341_v18  ;;  %213 = vadd.xlane.f32.xlu0 %v212_v55  ;;  %v1507_v14 = vadd.f32 %v1244_v15, %v516_v2  ;;  %v1511_v33 = vmul.f32 %v1229_v48, %v1156_v60  ;;  %v556_v24 = vstv %s551_s15  ;;  %v559_v59 = vstv %s1460_s13 }
  0x62   :  { %v447_v57 = vmax.f32 %v417_v16, %v446_v17  ;;  %v557_v20 = vmin.f32 %v556_v24, %v1487_v4  ;;  %v558_v35 = vmin.f32 %v556_v24, %v1492_v30  ;;  %v560_v15 = vmax.f32 %v559_v59, %v1476_v46 }
  0x63   :  { %v561_v60 = vmax.f32 %v559_v59, %v1484_v21  ;;  %v566_v48 = vstv %s554_s21  ;;  %v569_v29 = vstv %s1479_s17  ;;  %v578_v27 = vstv %s555_s22 }
  0x64   :  { %v567_v0 = vmin.f32 %v566_v48, %v1504_v7  ;;  %v568_v25 = vmin.f32 %v566_v48, %v1507_v14  ;;  %v570_v22 = vmax.f32 %v569_v29, %v1495_v53  ;;  %v571_v43 = vmax.f32 %v569_v29, %v1498_v56 }
  0x65   :  { %v562_v26 = vsub.f32 %v557_v20, %v560_v15  ;;  %v563_v47 = vsub.f32 %v558_v35, %v561_v60  ;;  %v600_v1 = vstv %s1518_s23  ;;  %vm483_vm1 = vcmask 1045504  }
  0x66   :  { %v572_v41 = vsub.f32 %v567_v0, %v570_v22  ;;  %v573_v38 = vsub.f32 %v568_v25, %v571_v43  ;;  %v579_v3 = vadd.f32 %v578_v27, %v1469_v44  ;;  %v580_v34 = vadd.f32 %v578_v27, %v1511_v33 }
  0x67   :  { %v564_v23 = vmax.f32 %v562_v26, 0.0  ;;  %v565_v62 = vmax.f32 %v563_v47, 0.0  ;;  %v601_v49 = vmin.f32 %v600_v1, %v1487_v4  ;;  %v602_v63 = vmin.f32 %v600_v1, %v1492_v30 }
  0x68   :  { %v912_v37 = vpop.eup %911  ;;  %v574_v61 = vmax.f32 %v572_v41, 0.0  ;;  %v575_v8 = vmax.f32 %v573_v38, 0.0  ;;  %v603_v13 = vstv %s1531_s24  ;;  %v610_v50 = vstv %s598_s25 }
  0x69   :  { %v476_v32 = vmul.f32 %v912_v37, %v1447_v36  ;;  %v604_v9 = vmax.f32 %v603_v13, %v1476_v46  ;;  %v605_v11 = vmax.f32 %v603_v13, %v1484_v21  ;;  %v611_v6 = vmin.f32 %v610_v50, %v1504_v7 }
  0x6a   :  { %v1559_v19 = vmul.f32 %v574_v61, %v564_v23  ;;  %v1561_v28 = vmul.f32 %v575_v8, %v565_v62  ;;  %v612_v16 = vmin.f32 %v610_v50, %v1507_v14  ;;  %v613_v52 = vstv %s597_s27 }
  0x6b   :  { %v477_v39 = vmax.f32 %v447_v57, %v476_v32  ;;  %v606_v40 = vsub.f32 %v601_v49, %v604_v9  ;;  %v607_v36 = vsub.f32 %v602_v63, %v605_v11  ;;  %v614_v51 = vmax.f32 %v613_v52, %v1495_v53 }
  0x6c   :  { %v581_v42 = vsub.f32 %v579_v3, %v1559_v19  ;;  %v582_v5 = vsub.f32 %v580_v34, %v1561_v28  ;;  %v615_v54 = vmax.f32 %v613_v52, %v1498_v56  ;;  %v622_v2 = vstv %s599_s28 }
  0x6d   :  { %vm478_vm2 = vcmp.le.f32.partialorder %v477_v39, 0.5  ;;  %v608_v12 = vmax.f32 %v606_v40, 0.0  ;;  %v609_v31 = vmax.f32 %v607_v36, 0.0  ;;  %v616_v58 = vsub.f32 %v611_v6, %v614_v51 }
  0x6e   :  { %v952_v18 = vmov 0.0   ;;  %913 = vrcp.f32 %v581_v42  ;;  %v617_v17 = vsub.f32 %v612_v16, %v615_v54  ;;  %v623_v24 = vadd.f32 %v622_v2, %v1469_v44 }
  0x6f   :  { %v793_v55 = vsel %vm478_vm2, 1.0, %v952_v18  ;;  %915 = vrcp.f32 %v582_v5  ;;  %v618_v20 = vmax.f32 %v616_v58, 0.0  ;;  %v624_v35 = vadd.f32 %v622_v2, %v1511_v33 }
  0x70   :  { %v482_v57 = vmul.f32 %v793_v55, %v1451_v45  ;;  %v619_v59 = vmax.f32 %v617_v17, 0.0  ;;  %v644_v15 = vstv %s639_s5  ;;  %v647_v60 = vstv %s1565_s30  ;;  %s937_s30 = scalar_lea.hbm %s1622_s4, 16 }
  0x71   :  { %v654_v48 = vstv %s642_s6  ;;  %v620_v0 = vmul.f32 %v618_v20, %v608_v12  ;;  %v645_v25 = vmin.f32 %v644_v15, %v1487_v4  ;;  %v646_v22 = vmin.f32 %v644_v15, %v1492_v30  ;;  %p938_p5 = scmp.ne.s32.totalorder %s1622_s4, %s937_s30  ;;  %p941_p6 = scmp.lt.u32.totalorder %s937_s30, %s1622_s4 }
  0x72   :  { %v484_v29 = vsel %vm483_vm1, %v482_v57, 0.0  ;;  %v621_v43 = vmul.f32 %v619_v59, %v609_v31  ;;  %v648_v26 = vmax.f32 %v647_v60, %v1476_v46  ;;  %v649_v47 = vmax.f32 %v647_v60, %v1484_v21 }
  0x73   :  { %485 = vadd.xlane.f32.xlu0 %v484_v29  ;;  %v655_v27 = vmin.f32 %v654_v48, %v1504_v7  ;;  %v625_v1 = vsub.f32 %v623_v24, %v620_v0  ;;  %v656_v41 = vmin.f32 %v654_v48, %v1507_v14  ;;  %v657_v38 = vstv %s641_s7  ;;  %p943_p7 = pnand %p941_p6, %p938_p5 }
  0x74   :  { %v626_v3 = vsub.f32 %v624_v35, %v621_v43  ;;  %v650_v34 = vsub.f32 %v645_v25, %v648_v26  ;;  %v651_v23 = vsub.f32 %v646_v22, %v649_v47  ;;  %v658_v62 = vmax.f32 %v657_v38, %v1495_v53 }
  0x75   :  { %917 = vrcp.f32 %v625_v1  ;;  %v659_v4 = vmax.f32 %v657_v38, %v1498_v56  ;;  %v666_v30 = vstv %s643_s8  ;;  %vm688_vm5 = vcmask 1041408  }
  0x76   :  { %919 = vrcp.f32 %v626_v3  ;;  %v652_v49 = vmax.f32 %v650_v34, 0.0  ;;  %v660_v46 = vsub.f32 %v655_v27, %v658_v62  ;;  %v653_v63 = vmax.f32 %v651_v23, 0.0 }
  0x77   :  { %v661_v21 = vsub.f32 %v656_v41, %v659_v4  ;;  %v667_v61 = vadd.f32 %v666_v30, %v1469_v44  ;;  %v668_v13 = vadd.f32 %v666_v30, %v1511_v33 }
  0x78   :  { %v914_v37 = vpop.eup %913  ;;  %v662_v7 = vmax.f32 %v660_v46, 0.0 }
  0x79   :  { %v916_v14 = vpop.eup %915  ;;  %v663_v8 = vmax.f32 %v661_v21, 0.0  ;;  %v584_v6 = vmul.f32 %v914_v37, %v1559_v19 }
  0x7a   :  { %v586_v50 = vmul.f32 %v916_v14, %v1561_v28  ;;  %v664_v53 = vmul.f32 %v662_v7, %v652_v49  ;;  %v750_v28 = vld [vmem:[%s1620_s2 + $0x18] sm:$0xf] }
  0x7b   :  { %v665_v32 = vmul.f32 %v663_v8, %v653_v63  ;;  %v587_v40 = vmax.f32 %v584_v6, 0.0  ;;  %v683_v19 = vmul.f32 %v750_v28, %v1445_v10 }
  0x7c   :  { %v669_v9 = vsub.f32 %v667_v61, %v664_v53  ;;  %v588_v16 = vmax.f32 %v586_v50, 0.0 }
  0x7d   :  { %v670_v56 = vsub.f32 %v668_v13, %v665_v32 }
  0x7e   :  { %921 = vrcp.f32 %v669_v9 }
  0x7f   :  { %v918_v11 = vpop.eup %917  ;;  %923 = vrcp.f32 %v670_v56 }
  0x80   :  { %v920_v52 = vpop.eup %919  ;;  %v628_v44 = vmul.f32 %v918_v11, %v620_v0 }
  0x81   :  { %v630_v39 = vmul.f32 %v920_v52, %v621_v43 }
  0x82   :  { %v631_v51 = vmax.f32 %v587_v40, %v628_v44 }
  0x83   :  { %v632_v36 = vmax.f32 %v588_v16, %v630_v39 }
  0x88   :  { %v922_v42 = vpop.eup %921 }
  0x89   :  { %v924_v33 = vpop.eup %923  ;;  %v672_v5 = vmul.f32 %v922_v42, %v664_v53 }
  0x8a   :  { %v674_v54 = vmul.f32 %v924_v33, %v665_v32 }
  0x8b   :  { %v675_v2 = vmax.f32 %v631_v51, %v672_v5 }
  0x8c   :  { %v676_v12 = vmax.f32 %v632_v36, %v674_v54 }
  0x8d   :  { %vm677_vm3 = vcmp.le.f32.partialorder %v675_v2, 0.5 }
  0x8e   :  { %vm678_vm4 = vcmp.le.f32.partialorder %v676_v12, 0.5  ;;  %v806_v31 = vsel %vm677_vm3, 1.0, %v952_v18 }
  0x8f   :  { %v807_v58 = vsel %vm678_vm4, 1.0, %v952_v18  ;;  %v684_v55 = vmul.f32 %v806_v31, %v1451_v45 }
  0x90   :  { %v685_v17 = vmul.f32 %v807_v58, %v683_v19 }
  0x91   :  { %v689_v24 = vrot.slane %v684_v55, 6 }
  0x92   :  { %v690_v57 = vrot.slane %v685_v17, 6 }
  0x94   :  { %v691_v20 = vsel %vm688_vm5, %v689_v24, %v690_v57 }
  0x95   :  { %v693_v35 = vsel %vm483_vm1, %v691_v20, 0.0 }
  0x96   :  { %694 = vadd.xlane.f32.xlu1 %v693_v35 }
  0xac   :  { %v160_v59 = vpop.xlane.xlu1 %159 }
  0xad   :  { %v161_v10 = vrot.slane %v160_v59, 4 }
  0xaf   :  { %v162_v25 = vadd.f32 %v161_v10, %v160_v59 }
  0xb1   :  { %v163_v45 = vrot.slane %v162_v25, 2 }
  0xb3   :  { %v164_v38 = vadd.f32 %v163_v45, %v162_v25 }
  0xb4   :  { %v178_v15 = vpop.xlane.xlu1 %177 }
  0xb5   :  { %v179_v29 = vrot.slane %v178_v15, 4  ;;  %v165_v62 = vrot.slane %v164_v38, 1 }
  0xb7   :  { %v180_v18 = vadd.f32 %v179_v29, %v178_v15  ;;  %v166_v46 = vadd.f32 %v165_v62, %v164_v38 }
  0xb9   :  { %v181_v26 = vrot.slane %v180_v18, 2 }
  0xbb   :  { %v182_v34 = vadd.f32 %v181_v26, %v180_v18 }
  0xbd   :  { %v183_v30 = vrot.slane %v182_v34, 1 }
  0xbf   :  { %v184_v21 = vadd.f32 %v183_v30, %v182_v34 }
  0xc7   :  { %v102_v60 = vpop.xlane.xlu0 %101 }
  0xc8   :  { %v103_v48 = vrot.slane %v102_v60, 4 }
  0xca   :  { %v104_v0 = vadd.f32 %v103_v48, %v102_v60 }
  0xcc   :  { %v105_v22 = vrot.slane %v104_v0, 2 }
  0xce   :  { %v106_v43 = vadd.f32 %v105_v22, %v104_v0 }
  0xd0   :  { %v107_v47 = vrot.slane %v106_v43, 1 }
  0xd1   :  { %v140_v27 = vpop.xlane.xlu0 %139 }
  0xd2   :  { %v141_v1 = vrot.slane %v140_v27, 4  ;;  %v108_v41 = vadd.f32 %v107_v47, %v106_v43 }
  0xd4   :  { %v142_v3 = vadd.f32 %v141_v1, %v140_v27  ;;  %808 = vpush %v108_v41 }
  0xd6   :  { %v143_v23 = vrot.slane %v142_v3, 2 }
  0xd8   :  { %v144_v4 = vadd.f32 %v143_v23, %v142_v3 }
  0xda   :  { %v145_v49 = vrot.slane %v144_v4, 1 }
  0xdc   :  { %v146_v63 = vadd.f32 %v145_v49, %v144_v4 }
  0xde   :  { %810 = vpush %v146_v63 }
  0xdf   :  { %812 = vpush %v166_v46 }
  0xe0   :  { %814 = vpush %v184_v21 }
  0xee   :  { %v343_v37 = vpop.xlane.xlu1 %342  ;;  %v214_v7 = vpop.xlane.xlu0 %213 }
  0xef   :  { %v344_v61 = vrot.slane %v343_v37, 4  ;;  %v215_v14 = vrot.slane %v214_v7, 4 }
  0xf1   :  { %v345_v8 = vadd.f32 %v344_v61, %v343_v37  ;;  %v216_v13 = vadd.f32 %v215_v14, %v214_v7 }
  0xf3   :  { %v346_v50 = vrot.slane %v345_v8, 2  ;;  %v217_v53 = vrot.slane %v216_v13, 2 }
  0xf5   :  { %v218_v32 = vadd.f32 %v217_v53, %v216_v13  ;;  %v347_v9 = vadd.f32 %v346_v50, %v345_v8 }
  0xf7   :  { %v219_v56 = vrot.slane %v218_v32, 1  ;;  %v348_v11 = vrot.slane %v347_v9, 1 }
  0xf9   :  { %v220_v6 = vadd.f32 %v219_v56, %v218_v32  ;;  %v349_v16 = vadd.f32 %v348_v11, %v347_v9 }
  0xfb   :  { %816 = vpush %v220_v6 }
  0xfc   :  { %818 = vpush %v349_v16 }
 0x100   :  { %v486_v52 = vpop.xlane.xlu0 %485 }
 0x101   :  { %v487_v39 = vrot.slane %v486_v52, 4 }
 0x103   :  { %v488_v40 = vadd.f32 %v487_v39, %v486_v52 }
 0x105   :  { %v489_v44 = vrot.slane %v488_v40, 2  ;;  %s809_s2 = spop %808 }
 0x106   :  { %s112_s11 = smul.f32 0.5, %s809_s2 }
 0x107   :  { %v490_v36 = vadd.f32 %v489_v44, %v488_v40 }
 0x108   :  { %716 = sst [smem:[#allocation5 + $0x1]] %s112_s11 }
 0x109   :  { %v491_v51 = vrot.slane %v490_v36, 1 }
 0x10b   :  { %v492_v42 = vadd.f32 %v491_v51, %v490_v36 }
 0x10d   :  { %820 = vpush %v492_v42 }
 0x10f   :  { %s811_s3 = spop %810 }
 0x110   :  { %s150_s12 = smul.f32 0.5, %s811_s3  ;;  %s813_s13 = spop %812 }
 0x111   :  { %s168_s14 = smul.f32 0.25, %s813_s13  ;;  %s815_s15 = spop %814 }
 0x112   :  { %s708_s16 = sadd.f32 %s150_s12, %s112_s11  ;;  %s186_s17 = smul.f32 0.25, %s815_s15 }
 0x113   :  { %718 = sst [smem:[#allocation5 + $0x2]] %s150_s12 }
 0x114   :  { %s709_s18 = sadd.f32 %s708_s16, %s168_s14 }
 0x115   :  { %720 = sst [smem:[#allocation5 + $0x3]] %s168_s14 }
 0x116   :  { %s710_s21 = sadd.f32 %s709_s18, %s186_s17 }
 0x117   :  { %722 = sst [smem:[#allocation5 + $0x4]] %s186_s17 }
 0x123   :  { %v695_v33 = vpop.xlane.xlu1 %694 }
 0x124   :  { %v696_v28 = vrot.slane %v695_v33, 4 }
 0x126   :  { %v697_v5 = vadd.f32 %v696_v28, %v695_v33 }
 0x128   :  { %v698_v54 = vrot.slane %v697_v5, 2 }
 0x12a   :  { %v699_v2 = vadd.f32 %v698_v54, %v697_v5 }
 0x12c   :  { %v700_v12 = vrot.slane %v699_v2, 1  ;;  %s817_s19 = spop %816 }
 0x12d   :  { %s819_s20 = spop %818 }
 0x12e   :  { %v701_v19 = vadd.f32 %v700_v12, %v699_v2  ;;  %s353_s22 = smul.f32 0.5, %s819_s20 }
 0x130   :  { %822 = vpush %v701_v19  ;;  %726 = sst [smem:[#allocation5 + $0x6]] %s353_s22 }
 0x13e   :  { %s821_s23 = spop %820 }
 0x161   :  { %s823_s0 = spop %822 }
 0x162   :  { %s703_s24 = sadd.f32 %s823_s0, %s821_s23 }
 0x164   :  { %s704_s25 = sadd.f32 %s817_s19, %s703_s24 }
 0x166   :  { %s707_s26 = smul.f32 0.5, %s704_s25 }
 0x168   :  { %s711_s27 = sadd.f32 %s710_s21, %s707_s26 }
 0x169   :  { %724 = sst [smem:[#allocation5 + $0x5]] %s707_s26 }
 0x16a   :  { %s712_s1 = sadd.f32 %s711_s27, %s353_s22 }
 0x16c   :  { %714 = sst [smem:[#allocation5]] %s712_s1 }
 0x16d   :  { %946 = shalt.err (!%p943_p7)
}
 0x16e   :  { %s953_s9 = smov [#allocation5]  }
 0x16f   :  { %734 = dma.smem_to_hbm %s953_s9, 16, %s1622_s4, [#allocation3]  }
 0x170   :  { %949 = dma.done.wait [#allocation3], 16  }
 0x171   :  { %950 = vsyncadd [#allocation3], 4294967280 }
 0x172   :  { %738 = sfence }
 0x173   :  { %739 = vsyncpa [#allocation3], 1 }
 0x174   :  { %740 = vsyncpa [#allocation4], 1 }

</bundles_post_ra>
